<compile_context>
chip_gen: v7x
topology: tpu7x:2x2x1
jax: 0.10.0
libtpu: 0.0.40
codegen_flags: <defaults>
</compile_context>

<pallas_src>
import functools

import jax
import jax.numpy as jnp
from jax.experimental import pallas as pl
from jax.experimental.pallas import tpu as pltpu

D_MODEL = 32
EXPAND = 2
D_INNER = EXPAND * D_MODEL            # 64
D_STATE = 16
D_CONV = 4
DT_RANK = -(-D_MODEL // 16)           # ceil(d_model / 16) = 2
LN_EPS = 1e-5

# ---- packed-weight layout --------------------------------------------------
# Wmat (WMAT_ROWS, 128): all `act @ W` matrices, 128 lanes wide.
ROW_IN = 0                              # rows [0,32):  in_proj  [w_in_x | w_in_z]
ROW_XP = D_MODEL                        # rows [32,96): x_proj   [w_dt@dt_w | w_B | w_C | 0]
ROW_OUT = D_MODEL + D_INNER             # rows [96,160): out_proj (lanes [0,32), zero-padded)
WMAT_ROWS = D_MODEL + 2 * D_INNER       # 160

# Wvec (WVEC_ROWS, 128): A_T + all small per-channel vectors.
VROW_AT = 0                             # rows [0,16):  A_T     (lanes [0,64))
VROW_CONVW = D_STATE                    # rows [16,20): conv_w  (lanes [0,64))
VROW_LN = D_STATE + D_CONV              # row 20: [ln_w | ln_b | conv_b]
VROW_DTB = VROW_LN + 1                  # row 21: [dt_b | D]
WVEC_ROWS = 24                          # padded to a multiple of 8 rows


def _silu(x):
    return x * jax.nn.sigmoid(x)


def _pick_tl(L):
    """Largest time-chunk length (out of 64/32/16/8) dividing L, else L."""
    for c in (64, 32, 16, 8):
        if L % c == 0:
            return c
    # TODO(synk): pad L to a multiple of 8 wrapper-side for odd lengths.
    return L


def mamba_block_kernel(x_ref, wmat_ref, wvec_ref, out_ref,
                       delta_scr, du_scr, bm_scr, cm_scr,
                       dA_scr, dBu_scr, cmp_scr, y_scr,
                       *, Bt, L, TL):
    """One grid step processes Bt batch elements packed into lanes."""
    BtD = Bt * D_INNER
    NT = Bt * L                                    # tokens handled this step
    n_chunks = L // TL
    SL = min(TL, 16)                               # precompute sub-slab rows
    U = 4 if TL % 4 == 0 else (2 if TL % 2 == 0 else 1)   # manual scan unroll

    # --- unpack the two packed weight blocks (static, aligned slices) ---
    w_in = wmat_ref[ROW_IN:ROW_IN + D_MODEL, :]                     # (32, 128)
    w_xp = wmat_ref[ROW_XP:ROW_XP + D_INNER, :]                     # (64, 128)
    w_out = wmat_ref[ROW_OUT:ROW_OUT + D_INNER, :]                  # (64, 128) lane-dense

    A_T = wvec_ref[VROW_AT:VROW_AT + D_STATE, 0:D_INNER]            # (16, 64)
    conv_w = wvec_ref[VROW_CONVW:VROW_CONVW + D_CONV, 0:D_INNER]    # (4, 64)
    ln_w = wvec_ref[VROW_LN:VROW_LN + 1, 0:D_MODEL]                 # (1, 32)
    ln_b = wvec_ref[VROW_LN:VROW_LN + 1, D_MODEL:2 * D_MODEL]       # (1, 32)
    conv_b = wvec_ref[VROW_LN:VROW_LN + 1,
                      2 * D_MODEL:2 * D_MODEL + D_INNER]            # (1, 64)
    dt_b = wvec_ref[VROW_DTB:VROW_DTB + 1, 0:D_INNER]               # (1, 64)
    d_skip = wvec_ref[VROW_DTB:VROW_DTB + 1, D_INNER:2 * D_INNER]   # (1, 64)

    # --- unpack lane-packed activations to token-major rows (b*L + t) ---
    xp = x_ref[...]                                                 # (L, Bt*32)
    x2 = jnp.concatenate(
        [xp[:, b * D_MODEL:(b + 1) * D_MODEL] for b in range(Bt)],
        axis=0).astype(jnp.float32)                                 # (NT, 32)

    # --- LayerNorm (Block.norm) ---
    mean = jnp.mean(x2, axis=-1, keepdims=True)
    xc = x2 - mean
    var = jnp.mean(xc * xc, axis=-1, keepdims=True)
    xn = xc * jax.lax.rsqrt(var + LN_EPS) * ln_w + ln_b

    # --- fused in_proj: one lane-dense (32,128) matmul, slice x / z ---
    xz = jnp.dot(xn, w_in, preferred_element_type=jnp.float32)      # (NT, 128)
    xi2 = xz[:, 0:D_INNER]                                          # (NT, 64)
    z2 = xz[:, D_INNER:2 * D_INNER]                                 # (NT, 64)

    # --- causal depthwise conv1d + SiLU via XLU roll + causal mask ---
    # conv[t] = bias + sum_j conv_w[D_CONV-1-j] * x[t-j]  (zeros for t-j < 0)
    t_idx = jax.lax.broadcasted_iota(
        jnp.int32, (Bt, L, D_INNER), 1).reshape(NT, D_INNER)
    conv = jnp.broadcast_to(conv_b, (NT, D_INNER))
    for j in range(D_CONV):
        tap = conv_w[D_CONV - 1 - j:D_CONV - j, :]                  # (1, 64)
        if j == 0:
            shifted = xi2
        else:
            shifted = jnp.where(t_idx >= j,
                                pltpu.roll(xi2, shift=j, axis=0), 0.0)
        conv = conv + shifted * tap
    u2 = _silu(conv)                                                # (NT, 64)

    # --- fused x_proj (dt_rank folded into a 64x64 block) + softplus ---
    dtbc = jnp.dot(u2, w_xp, preferred_element_type=jnp.float32)    # (NT, 128)
    delta2 = jax.nn.softplus(dtbc[:, 0:D_INNER] + dt_b)             # (NT, 64)
    bm2 = dtbc[:, D_INNER:D_INNER + D_STATE]                        # (NT, 16)
    cm2 = dtbc[:, D_INNER + D_STATE:D_INNER + 2 * D_STATE]          # (NT, 16)

    # stash token-major per-step inputs; the chunk loop slices them by rows
    delta_scr[...] = delta2
    du_scr[...] = delta2 * u2
    bm_scr[...] = bm2
    cm_scr[...] = cm2

    # --- time-chunked selective scan ----------------------------------------
    #   per chunk: precompute exp(delta*A), delta*B*u, C-broadcast  (wide
    #   VPU/EUP passes into chunk-sized scratch), then a serial recurrence
    #   with the C·h reduce fused into each step.
    def chunk(k, h):
        if isinstance(k, int):
            t0 = k * TL
        else:
            t0 = pl.multiple_of(k * TL, TL)

        # per-batch sub-slab precompute (direct lane-range stores, no concat)
        for b in range(Bt):
            lo, hi = b * D_INNER, (b + 1) * D_INNER
            for s0 in range(0, TL, SL):
                sl = min(SL, TL - s0)
                rb = b * L + t0 + s0
                d_b = delta_scr[pl.ds(rb, sl), :]                   # (sl, 64)
                du_b = du_scr[pl.ds(rb, sl), :]                     # (sl, 64)
                bm_b = bm_scr[pl.ds(rb, sl), :]                     # (sl, 16)
                cm_b = cm_scr[pl.ds(rb, sl), :]                     # (sl, 16)
                dA_scr[s0:s0 + sl, :, lo:hi] = jnp.exp(
                    d_b[:, None, :] * A_T[None, :, :])              # (sl,16,64)
                dBu_scr[s0:s0 + sl, :, lo:hi] = (
                    bm_b[:, :, None] * du_b[:, None, :])            # (sl,16,64)
                cmp_scr[s0:s0 + sl, :, lo:hi] = jnp.broadcast_to(
                    cm_b[:, :, None], (sl, D_STATE, D_INNER))       # (sl,16,64)

        # serial recurrence, manually unrolled xU; y reduce fused into the
        # step (off the h critical path -> XLU/store slots are free filler).
        def step_group(g, hc):
            base = g * U
            for uu in range(U):
                t = base + uu
                hc = dA_scr[t] * hc + dBu_scr[t]
                y_scr[t0 + t] = jnp.sum(cmp_scr[t] * hc, axis=0,
                                        keepdims=True)              # (1, BtD)
            return hc

        return jax.lax.fori_loop(0, TL // U, step_group, h)

    h0 = jnp.zeros((D_STATE, BtD), jnp.float32)
    if n_chunks == 1:
        chunk(0, h0)
    else:
        jax.lax.fori_loop(0, n_chunks, chunk, h0)

    # --- D skip, SiLU(z) gate, lane-dense out_proj ---
    y_all = y_scr[...].reshape(L, BtD)
    y_tok = jnp.concatenate(
        [y_all[:, b * D_INNER:(b + 1) * D_INNER] for b in range(Bt)], axis=0)
    y2 = (y_tok + u2 * d_skip) * _silu(z2)                          # (NT, 64)
    out2 = jnp.dot(y2, w_out, preferred_element_type=jnp.float32)   # (NT, 128)

    # direct per-batch lane-slab stores into the packed output block
    for b in range(Bt):
        out_ref[:, b * D_MODEL:(b + 1) * D_MODEL] = (
            out2[b * L:(b + 1) * L, 0:D_MODEL].astype(out_ref.dtype))


def _pack_weights(p):
    """Fold the 14 raw parameters into 2 lane-dense packed arrays."""
    f32 = jnp.float32

    w_in = jnp.concatenate([p["w_in_x"], p["w_in_z"]], axis=1)           # (32,128)
    w_delta = (p["w_dt"] @ p["dt_w"]).astype(f32)                         # (64,64)
    w_xp = jnp.concatenate(
        [w_delta, p["w_B"], p["w_C"],
         jnp.zeros((D_INNER, 128 - D_INNER - 2 * D_STATE), f32)], axis=1)  # (64,128)
    w_out = jnp.concatenate(
        [p["w_out"], jnp.zeros((D_INNER, 128 - D_MODEL), f32)], axis=1)    # (64,128)
    wmat = jnp.concatenate([w_in, w_xp, w_out], axis=0)                    # (160,128)

    def pad128(a):
        return jnp.concatenate(
            [a, jnp.zeros((a.shape[0], 128 - a.shape[1]), f32)], axis=1)

    row_ln = jnp.concatenate([p["ln_w"], p["ln_b"], p["conv_b"]], axis=1)  # (1,128)
    row_dtb = jnp.concatenate([p["dt_b"], p["D"]], axis=1)                 # (1,128)
    wvec = jnp.concatenate(
        [pad128(p["A_T"]), pad128(p["conv_w"]), row_ln, row_dtb,
         jnp.zeros((WVEC_ROWS - D_STATE - D_CONV - 2, 128), f32)], axis=0)  # (24,128)
    return wmat, wvec


def mamba_block_forward(x, p):
    B, L, d_model = x.shape
    assert d_model == D_MODEL

    # Batch packing: Bt batches share lanes.  Bt=4 gives 128-lane dense HBM
    # blocks (biggest writeback lever); require B>=8 so dual-TC chips (v7x)
    # still get >= 2 grid steps.  Bt=2 otherwise when B is even.
    if B % 4 == 0 and B >= 8:
        Bt = 4
    elif B % 2 == 0:
        Bt = 2
    else:
        Bt = 1
    nG = B // Bt
    TL = _pick_tl(L)
    NT = Bt * L
    BtD = Bt * D_INNER

    wmat, wvec = _pack_weights(p)

    # wrapper-side layout plumbing (plain XLA ops):
    #   x_packed[g, t, b*D + c] = x[g*Bt + b, t, c]
    x_packed = (x.reshape(nG, Bt, L, D_MODEL)
                 .transpose(0, 2, 1, 3)
                 .reshape(nG, L, Bt * D_MODEL))

    kern = functools.partial(mamba_block_kernel, Bt=Bt, L=L, TL=TL)
    out_packed = pl.pallas_call(
        kern,
        out_shape=jax.ShapeDtypeStruct((nG, L, Bt * D_MODEL), x.dtype),
        grid_spec=pltpu.PrefetchScalarGridSpec(
            num_scalar_prefetch=0,
            grid=(nG,),
            in_specs=[
                pl.BlockSpec((None, L, Bt * D_MODEL), lambda g: (g, 0, 0)),
                pl.BlockSpec((WMAT_ROWS, 128), lambda g: (0, 0)),
                pl.BlockSpec((WVEC_ROWS, 128), lambda g: (0, 0)),
            ],
            out_specs=pl.BlockSpec((None, L, Bt * D_MODEL), lambda g: (g, 0, 0)),
            scratch_shapes=[
                pltpu.VMEM((NT, D_INNER), jnp.float32),        # delta   (token-major)
                pltpu.VMEM((NT, D_INNER), jnp.float32),        # delta*u (token-major)
                pltpu.VMEM((NT, D_STATE), jnp.float32),        # B       (token-major)
                pltpu.VMEM((NT, D_STATE), jnp.float32),        # C       (token-major)
                pltpu.VMEM((TL, D_STATE, BtD), jnp.float32),   # exp(dt*A), chunk-sized
                pltpu.VMEM((TL, D_STATE, BtD), jnp.float32),   # dt*B*u,    chunk-sized
                pltpu.VMEM((TL, D_STATE, BtD), jnp.float32),   # C bcast,   chunk-sized
                pltpu.VMEM((L, 1, BtD), jnp.float32),          # y = C.h
            ],
        ),
        compiler_params=pltpu.CompilerParams(
            dimension_semantics=("parallel",),
            vmem_limit_bytes=32 * 1024 * 1024),
    )(x_packed, wmat, wvec)

    out = (out_packed.reshape(nG, L, Bt, D_MODEL)
                     .transpose(0, 2, 1, 3)
                     .reshape(B, L, D_MODEL))

    # fused-add-norm prenorm path with residual=None returns the input itself
    # as the residual; returning `x` directly avoids any extra HBM traffic.
    return out, x


def init_params(key):
    ks = jax.random.split(key, 9)
    s = 0.1
    return {
        "ln_w": jnp.ones((1, D_MODEL), jnp.float32),
        "ln_b": jnp.zeros((1, D_MODEL), jnp.float32),
        "w_in_x": s * jax.random.normal(ks[0], (D_MODEL, D_INNER), jnp.float32),
        "w_in_z": s * jax.random.normal(ks[1], (D_MODEL, D_INNER), jnp.float32),
        "conv_w": s * jax.random.normal(ks[2], (D_CONV, D_INNER), jnp.float32),
        "conv_b": s * jax.random.normal(ks[3], (1, D_INNER), jnp.float32),
        "w_dt": s * jax.random.normal(ks[4], (D_INNER, DT_RANK), jnp.float32),
        "w_B": s * jax.random.normal(ks[5], (D_INNER, D_STATE), jnp.float32),
        "w_C": s * jax.random.normal(ks[6], (D_INNER, D_STATE), jnp.float32),
        "dt_w": (DT_RANK ** -0.5)
                * jax.random.normal(ks[7], (DT_RANK, D_INNER), jnp.float32),
        # Mamba-style dt bias init: softplus^{-1}(0.01)
        "dt_b": jnp.full((1, D_INNER),
                         float(jnp.log(jnp.expm1(jnp.asarray(0.01)))),
                         jnp.float32),
        # A = -exp(A_log), A_log = log(arange(1, d_state+1)) per channel;
        # stored transposed as (d_state, d_inner)
        "A_T": -jnp.broadcast_to(
            jnp.arange(1, D_STATE + 1, dtype=jnp.float32)[:, None],
            (D_STATE, D_INNER)) + 0.0,
        "D": jnp.ones((1, D_INNER), jnp.float32),
        "w_out": s * jax.random.normal(ks[8], (D_INNER, D_MODEL), jnp.float32),
    }


def reference_forward(x, p):
    """Pure-jnp reference mirroring the Block(fused_add_norm)+Mamba slow path."""
    A = p["A_T"].T                                       # (d_inner, d_state)

    def one(xb):
        L = xb.shape[0]
        mean = jnp.mean(xb, axis=-1, keepdims=True)
        xc = xb - mean
        var = jnp.mean(xc * xc, axis=-1, keepdims=True)
        xn = xc * jax.lax.rsqrt(var + LN_EPS) * p["ln_w"] + p["ln_b"]
        xi = xn @ p["w_in_x"]
        z = xn @ p["w_in_z"]
        xpad = jnp.concatenate(
            [jnp.zeros((D_CONV - 1, D_INNER), xi.dtype), xi], axis=0)
        conv = jnp.broadcast_to(p["conv_b"], (L, D_INNER))
        for k in range(D_CONV):
            conv = conv + xpad[k:k + L] * p["conv_w"][k:k + 1]
        u = conv * jax.nn.sigmoid(conv)
        delta = jax.nn.softplus(u @ p["w_dt"] @ p["dt_w"] + p["dt_b"])
        Bm = u @ p["w_B"]
        Cm = u @ p["w_C"]

        def step(h, inp):
            d_t, u_t, b_t, c_t = inp
            dA = jnp.exp(d_t[:, None] * A)               # (d_inner, d_state)
            h = dA * h + (d_t * u_t)[:, None] * b_t[None, :]
            return h, (h * c_t[None, :]).sum(-1)

        h0 = jnp.zeros((D_INNER, D_STATE), jnp.float32)
        _, ys = jax.lax.scan(step, h0, (delta, u, Bm, Cm))
        y = (ys + u * p["D"]) * (z * jax.nn.sigmoid(z))
        return y @ p["w_out"]

    return jax.vmap(one)(x), x


if __name__ == "__main__":
    key = jax.random.PRNGKey(0)
    pkey, xkey = jax.random.split(key)
    params = init_params(pkey)

    B, L = 2, 8
    x = jax.random.normal(xkey, (B, L, D_MODEL), jnp.float32)

    out, residual = jax.block_until_ready(mamba_block_forward(x, params))

    ref_out, ref_res = reference_forward(x, params)
    assert out.shape == (B, L, D_MODEL) and residual.shape == (B, L, D_MODEL)
    assert jnp.allclose(out, ref_out, rtol=1e-3, atol=1e-3), \
        float(jnp.max(jnp.abs(out - ref_out)))
    assert jnp.allclose(residual, ref_res)
    print("KERNEL_OK")
</pallas_src>

<mosaic_0001>
module attributes {stable_mosaic.version = 11 : i64} {
  func.func @mamba_block_kernel(%arg0: i32, %arg1: memref<1x8x64xf32, #tpu.memory_space<vmem>>, %arg2: memref<160x128xf32, #tpu.memory_space<vmem>>, %arg3: memref<24x128xf32, #tpu.memory_space<vmem>>, %arg4: memref<1x8x64xf32, #tpu.memory_space<vmem>>, %arg5: memref<16x64xf32, #tpu.memory_space<vmem>>, %arg6: memref<16x64xf32, #tpu.memory_space<vmem>>, %arg7: memref<16x16xf32, #tpu.memory_space<vmem>>, %arg8: memref<16x16xf32, #tpu.memory_space<vmem>>, %arg9: memref<8x16x128xf32, #tpu.memory_space<vmem>>, %arg10: memref<8x16x128xf32, #tpu.memory_space<vmem>>, %arg11: memref<8x16x128xf32, #tpu.memory_space<vmem>>, %arg12: memref<8x1x128xf32, #tpu.memory_space<vmem>>) attributes {dimension_semantics = [#tpu.dimension_semantics<parallel>], iteration_bounds = array<i64: 1>, scalar_prefetch = 0 : i64, scratch_operands = 8 : i64, tpu.core_type = #tpu.core_type<tc>, window_params = [{transform_indices = @transform_0, window_bounds = array<i64: 1, 8, 64>}, {pipeline_mode = #tpu.pipeline_mode<synchronous>, transform_indices = @transform_1, window_bounds = array<i64: 160, 128>}, {pipeline_mode = #tpu.pipeline_mode<synchronous>, transform_indices = @transform_2, window_bounds = array<i64: 24, 128>}, {transform_indices = @transform_3, window_bounds = array<i64: 1, 8, 64>}]} {
    %c0 = arith.constant 0 : index
    %c0_0 = arith.constant 0 : index
    %0 = vector.load %arg2[%c0, %c0_0] : memref<160x128xf32, #tpu.memory_space<vmem>>, vector<32x128xf32>
    %c32 = arith.constant 32 : index
    %c0_1 = arith.constant 0 : index
    %1 = vector.load %arg2[%c32, %c0_1] : memref<160x128xf32, #tpu.memory_space<vmem>>, vector<64x128xf32>
    %c96 = arith.constant 96 : index
    %c0_2 = arith.constant 0 : index
    %2 = vector.load %arg2[%c96, %c0_2] : memref<160x128xf32, #tpu.memory_space<vmem>>, vector<64x128xf32>
    %c0_3 = arith.constant 0 : index
    %c0_4 = arith.constant 0 : index
    %3 = vector.load %arg3[%c0_3, %c0_4] : memref<24x128xf32, #tpu.memory_space<vmem>>, vector<16x64xf32>
    %c16 = arith.constant 16 : index
    %c0_5 = arith.constant 0 : index
    %4 = vector.load %arg3[%c16, %c0_5] : memref<24x128xf32, #tpu.memory_space<vmem>>, vector<4x64xf32>
    %c20 = arith.constant 20 : index
    %c0_6 = arith.constant 0 : index
    %5 = vector.load %arg3[%c20, %c0_6] : memref<24x128xf32, #tpu.memory_space<vmem>>, vector<1x32xf32>
    %c20_7 = arith.constant 20 : index
    %c32_8 = arith.constant 32 : index
    %6 = vector.load %arg3[%c20_7, %c32_8] : memref<24x128xf32, #tpu.memory_space<vmem>>, vector<1x32xf32>
    %c20_9 = arith.constant 20 : index
    %c64 = arith.constant 64 : index
    %7 = vector.load %arg3[%c20_9, %c64] : memref<24x128xf32, #tpu.memory_space<vmem>>, vector<1x64xf32>
    %c21 = arith.constant 21 : index
    %c0_10 = arith.constant 0 : index
    %8 = vector.load %arg3[%c21, %c0_10] : memref<24x128xf32, #tpu.memory_space<vmem>>, vector<1x64xf32>
    %c21_11 = arith.constant 21 : index
    %c64_12 = arith.constant 64 : index
    %9 = vector.load %arg3[%c21_11, %c64_12] : memref<24x128xf32, #tpu.memory_space<vmem>>, vector<1x64xf32>
    %c0_13 = arith.constant 0 : index
    %c0_14 = arith.constant 0 : index
    %c0_15 = arith.constant 0 : index
    %10 = vector.load %arg1[%c0_13, %c0_14, %c0_15] : memref<1x8x64xf32, #tpu.memory_space<vmem>>, vector<1x8x64xf32>
    %11 = vector.shape_cast %10 : vector<1x8x64xf32> to vector<8x64xf32>
    %12 = vector.extract_strided_slice %11 {offsets = [0, 0], sizes = [8, 32], strides = [1, 1]} : vector<8x64xf32> to vector<8x32xf32>
    %13 = vector.extract_strided_slice %11 {offsets = [0, 32], sizes = [8, 32], strides = [1, 1]} : vector<8x64xf32> to vector<8x32xf32>
    %14 = tpu.concatenate %12, %13 in 0 : vector<8x32xf32>, vector<8x32xf32> -> vector<16x32xf32>
    %cst = arith.constant dense<0.000000e+00> : vector<16xf32>
    %15 = vector.multi_reduction <add>, %14, %cst [1] : vector<16x32xf32> to vector<16xf32>
    %16 = vector.shape_cast %15 : vector<16xf32> to vector<16x1xf32>
    %cst_16 = arith.constant 3.200000e+01 : f32
    %17 = vector.broadcast %cst_16 : f32 to vector<16x1xf32>
    %18 = arith.divf %16, %17 : vector<16x1xf32>
    %19 = vector.broadcast %18 : vector<16x1xf32> to vector<16x32xf32>
    %20 = arith.subf %14, %19 : vector<16x32xf32>
    %21 = arith.mulf %20, %20 : vector<16x32xf32>
    %cst_17 = arith.constant dense<0.000000e+00> : vector<16xf32>
    %22 = vector.multi_reduction <add>, %21, %cst_17 [1] : vector<16x32xf32> to vector<16xf32>
    %23 = vector.shape_cast %22 : vector<16xf32> to vector<16x1xf32>
    %cst_18 = arith.constant 3.200000e+01 : f32
    %24 = vector.broadcast %cst_18 : f32 to vector<16x1xf32>
    %25 = arith.divf %23, %24 : vector<16x1xf32>
    %cst_19 = arith.constant 9.99999974E-6 : f32
    %26 = vector.broadcast %cst_19 : f32 to vector<16x1xf32>
    %27 = arith.addf %25, %26 : vector<16x1xf32>
    %28 = math.rsqrt %27 : vector<16x1xf32>
    %29 = vector.broadcast %28 : vector<16x1xf32> to vector<16x32xf32>
    %30 = arith.mulf %20, %29 : vector<16x32xf32>
    %31 = vector.broadcast %5 : vector<1x32xf32> to vector<16x32xf32>
    %32 = arith.mulf %30, %31 : vector<16x32xf32>
    %33 = vector.broadcast %6 : vector<1x32xf32> to vector<16x32xf32>
    %34 = arith.addf %32, %33 : vector<16x32xf32>
    %cst_20 = arith.constant dense<0.000000e+00> : vector<16x128xf32>
    %35 = tpu.matmul %34, %0, %cst_20 {dimension_numbers = #tpu.dot_dimension_numbers<[1], [0], [0], [1], [0, 0, 1, 1], [], []>} : vector<16x32xf32>, vector<32x128xf32>, vector<16x128xf32> -> vector<16x128xf32>
    %36 = vector.extract_strided_slice %35 {offsets = [0, 0], sizes = [16, 64], strides = [1, 1]} : vector<16x128xf32> to vector<16x64xf32>
    %37 = vector.extract_strided_slice %35 {offsets = [0, 64], sizes = [16, 64], strides = [1, 1]} : vector<16x128xf32> to vector<16x64xf32>
    %38 = tpu.iota {dimensions = array<i32: 1>} : vector<2x8x64xi32>
    %39 = vector.shape_cast %38 : vector<2x8x64xi32> to vector<16x64xi32>
    %40 = vector.shape_cast %7 : vector<1x64xf32> to vector<1x64xf32>
    %41 = vector.broadcast %40 : vector<1x64xf32> to vector<16x64xf32>
    %42 = vector.extract_strided_slice %4 {offsets = [3, 0], sizes = [1, 64], strides = [1, 1]} : vector<4x64xf32> to vector<1x64xf32>
    %43 = vector.broadcast %42 : vector<1x64xf32> to vector<16x64xf32>
    %44 = arith.mulf %36, %43 : vector<16x64xf32>
    %45 = arith.addf %41, %44 : vector<16x64xf32>
    %46 = vector.extract_strided_slice %4 {offsets = [2, 0], sizes = [1, 64], strides = [1, 1]} : vector<4x64xf32> to vector<1x64xf32>
    %c1_i32 = arith.constant 1 : i32
    %47 = vector.broadcast %c1_i32 : i32 to vector<16x64xi32>
    %48 = arith.cmpi sge, %39, %47 : vector<16x64xi32>
    %c1_i32_21 = arith.constant 1 : i32
    %49 = tpu.dynamic_rotate %36 by %c1_i32_21 dim 0 : vector<16x64xf32>, i32 -> vector<16x64xf32>
    %cst_22 = arith.constant 0.000000e+00 : f32
    %50 = vector.broadcast %cst_22 : f32 to vector<16x64xf32>
    %51 = arith.select %48, %49, %50 : vector<16x64xi1>, vector<16x64xf32>
    %52 = vector.broadcast %46 : vector<1x64xf32> to vector<16x64xf32>
    %53 = arith.mulf %51, %52 : vector<16x64xf32>
    %54 = arith.addf %45, %53 : vector<16x64xf32>
    %55 = vector.extract_strided_slice %4 {offsets = [1, 0], sizes = [1, 64], strides = [1, 1]} : vector<4x64xf32> to vector<1x64xf32>
    %c2_i32 = arith.constant 2 : i32
    %56 = vector.broadcast %c2_i32 : i32 to vector<16x64xi32>
    %57 = arith.cmpi sge, %39, %56 : vector<16x64xi32>
    %c2_i32_23 = arith.constant 2 : i32
    %58 = tpu.dynamic_rotate %36 by %c2_i32_23 dim 0 : vector<16x64xf32>, i32 -> vector<16x64xf32>
    %cst_24 = arith.constant 0.000000e+00 : f32
    %59 = vector.broadcast %cst_24 : f32 to vector<16x64xf32>
    %60 = arith.select %57, %58, %59 : vector<16x64xi1>, vector<16x64xf32>
    %61 = vector.broadcast %55 : vector<1x64xf32> to vector<16x64xf32>
    %62 = arith.mulf %60, %61 : vector<16x64xf32>
    %63 = arith.addf %54, %62 : vector<16x64xf32>
    %64 = vector.extract_strided_slice %4 {offsets = [0, 0], sizes = [1, 64], strides = [1, 1]} : vector<4x64xf32> to vector<1x64xf32>
    %c3_i32 = arith.constant 3 : i32
    %65 = vector.broadcast %c3_i32 : i32 to vector<16x64xi32>
    %66 = arith.cmpi sge, %39, %65 : vector<16x64xi32>
    %c3_i32_25 = arith.constant 3 : i32
    %67 = tpu.dynamic_rotate %36 by %c3_i32_25 dim 0 : vector<16x64xf32>, i32 -> vector<16x64xf32>
    %cst_26 = arith.constant 0.000000e+00 : f32
    %68 = vector.broadcast %cst_26 : f32 to vector<16x64xf32>
    %69 = arith.select %66, %67, %68 : vector<16x64xi1>, vector<16x64xf32>
    %70 = vector.broadcast %64 : vector<1x64xf32> to vector<16x64xf32>
    %71 = arith.mulf %69, %70 : vector<16x64xf32>
    %72 = arith.addf %63, %71 : vector<16x64xf32>
    %73 = arith.negf %72 : vector<16x64xf32>
    %74 = math.exp %73 : vector<16x64xf32>
    %cst_27 = arith.constant 1.000000e+00 : f32
    %75 = vector.broadcast %cst_27 : f32 to vector<16x64xf32>
    %76 = arith.addf %75, %74 : vector<16x64xf32>
    %77 = arith.divf %75, %76 : vector<16x64xf32>
    %78 = arith.mulf %72, %77 : vector<16x64xf32>
    %cst_28 = arith.constant dense<0.000000e+00> : vector<16x128xf32>
    %79 = tpu.matmul %78, %1, %cst_28 {dimension_numbers = #tpu.dot_dimension_numbers<[1], [0], [0], [1], [0, 0, 1, 1], [], []>} : vector<16x64xf32>, vector<64x128xf32>, vector<16x128xf32> -> vector<16x128xf32>
    %80 = vector.extract_strided_slice %79 {offsets = [0, 0], sizes = [16, 64], strides = [1, 1]} : vector<16x128xf32> to vector<16x64xf32>
    %81 = vector.broadcast %8 : vector<1x64xf32> to vector<16x64xf32>
    %82 = arith.addf %80, %81 : vector<16x64xf32>
    %cst_29 = arith.constant 0.000000e+00 : f32
    %83 = vector.broadcast %cst_29 : f32 to vector<16x64xf32>
    %84 = arith.maximumf %82, %83 : vector<16x64xf32>
    %85 = vector.broadcast %cst_29 : f32 to vector<16x64xf32>
    %86 = arith.subf %82, %85 : vector<16x64xf32>
    %87 = arith.cmpf one, %86, %86 : vector<16x64xf32>
    %88 = vector.broadcast %cst_29 : f32 to vector<16x64xf32>
    %89 = arith.addf %82, %88 : vector<16x64xf32>
    %90 = math.absf %86 : vector<16x64xf32>
    %cst_30 = arith.constant 0.000000e+00 : f32
    %91 = vector.broadcast %cst_30 : f32 to vector<16x64xf32>
    %92 = arith.subf %91, %90 : vector<16x64xf32>
    %93 = math.exp %92 : vector<16x64xf32>
    %94 = math.log1p %93 : vector<16x64xf32>
    %95 = arith.addf %84, %94 : vector<16x64xf32>
    %96 = arith.select %87, %89, %95 : vector<16x64xi1>, vector<16x64xf32>
    %97 = vector.extract_strided_slice %79 {offsets = [0, 64], sizes = [16, 16], strides = [1, 1]} : vector<16x128xf32> to vector<16x16xf32>
    %98 = vector.extract_strided_slice %79 {offsets = [0, 80], sizes = [16, 16], strides = [1, 1]} : vector<16x128xf32> to vector<16x16xf32>
    %c0_31 = arith.constant 0 : index
    %c0_32 = arith.constant 0 : index
    %99 = vector.load %arg5[%c0_31, %c0_32] : memref<16x64xf32, #tpu.memory_space<vmem>>, vector<16x64xf32>
    tpu.vector_store %arg5[%c0_31, %c0_32], %96 {strides = array<i32>} : memref<16x64xf32, #tpu.memory_space<vmem>>, vector<16x64xf32>,
    %100 = arith.mulf %96, %78 : vector<16x64xf32>
    %c0_33 = arith.constant 0 : index
    %c0_34 = arith.constant 0 : index
    %101 = vector.load %arg6[%c0_33, %c0_34] : memref<16x64xf32, #tpu.memory_space<vmem>>, vector<16x64xf32>
    tpu.vector_store %arg6[%c0_33, %c0_34], %100 {strides = array<i32>} : memref<16x64xf32, #tpu.memory_space<vmem>>, vector<16x64xf32>,
    %c0_35 = arith.constant 0 : index
    %c0_36 = arith.constant 0 : index
    %102 = vector.load %arg7[%c0_35, %c0_36] : memref<16x16xf32, #tpu.memory_space<vmem>>, vector<16x16xf32>
    tpu.vector_store %arg7[%c0_35, %c0_36], %97 {strides = array<i32>} : memref<16x16xf32, #tpu.memory_space<vmem>>, vector<16x16xf32>,
    %c0_37 = arith.constant 0 : index
    %c0_38 = arith.constant 0 : index
    %103 = vector.load %arg8[%c0_37, %c0_38] : memref<16x16xf32, #tpu.memory_space<vmem>>, vector<16x16xf32>
    tpu.vector_store %arg8[%c0_37, %c0_38], %98 {strides = array<i32>} : memref<16x16xf32, #tpu.memory_space<vmem>>, vector<16x16xf32>,
    %cst_39 = arith.constant 0.000000e+00 : f32
    %104 = vector.broadcast %cst_39 : f32 to vector<16x128xf32>
    %c0_40 = arith.constant 0 : index
    %c0_41 = arith.constant 0 : index
    %105 = vector.load %arg5[%c0_40, %c0_41] : memref<16x64xf32, #tpu.memory_space<vmem>>, vector<8x64xf32>
    %c0_42 = arith.constant 0 : index
    %c0_43 = arith.constant 0 : index
    %106 = vector.load %arg6[%c0_42, %c0_43] : memref<16x64xf32, #tpu.memory_space<vmem>>, vector<8x64xf32>
    %c0_44 = arith.constant 0 : index
    %c0_45 = arith.constant 0 : index
    %107 = vector.load %arg7[%c0_44, %c0_45] : memref<16x16xf32, #tpu.memory_space<vmem>>, vector<8x16xf32>
    %c0_46 = arith.constant 0 : index
    %c0_47 = arith.constant 0 : index
    %108 = vector.load %arg8[%c0_46, %c0_47] : memref<16x16xf32, #tpu.memory_space<vmem>>, vector<8x16xf32>
    %109 = vector.shape_cast %105 : vector<8x64xf32> to vector<8x1x64xf32>
    %110 = vector.shape_cast %3 : vector<16x64xf32> to vector<1x16x64xf32>
    %111 = vector.broadcast %109 : vector<8x1x64xf32> to vector<8x16x64xf32>
    %112 = vector.broadcast %110 : vector<1x16x64xf32> to vector<8x16x64xf32>
    %113 = arith.mulf %111, %112 : vector<8x16x64xf32>
    %114 = math.exp %113 : vector<8x16x64xf32>
    %c0_48 = arith.constant 0 : index
    %c0_49 = arith.constant 0 : index
    %c0_50 = arith.constant 0 : index
    %115 = vector.load %arg9[%c0_48, %c0_49, %c0_50] : memref<8x16x128xf32, #tpu.memory_space<vmem>>, vector<8x16x64xf32>
    tpu.vector_store %arg9[%c0_48, %c0_49, %c0_50], %114 {strides = array<i32>} : memref<8x16x128xf32, #tpu.memory_space<vmem>>, vector<8x16x64xf32>,
    %116 = vector.shape_cast %107 : vector<8x16xf32> to vector<8x16x1xf32>
    %117 = vector.shape_cast %106 : vector<8x64xf32> to vector<8x1x64xf32>
    %118 = vector.broadcast %116 : vector<8x16x1xf32> to vector<8x16x64xf32>
    %119 = vector.broadcast %117 : vector<8x1x64xf32> to vector<8x16x64xf32>
    %120 = arith.mulf %118, %119 : vector<8x16x64xf32>
    %c0_51 = arith.constant 0 : index
    %c0_52 = arith.constant 0 : index
    %c0_53 = arith.constant 0 : index
    %121 = vector.load %arg10[%c0_51, %c0_52, %c0_53] : memref<8x16x128xf32, #tpu.memory_space<vmem>>, vector<8x16x64xf32>
    tpu.vector_store %arg10[%c0_51, %c0_52, %c0_53], %120 {strides = array<i32>} : memref<8x16x128xf32, #tpu.memory_space<vmem>>, vector<8x16x64xf32>,
    %122 = vector.shape_cast %108 : vector<8x16xf32> to vector<8x16x1xf32>
    %123 = vector.shape_cast %122 : vector<8x16x1xf32> to vector<8x16x1xf32>
    %124 = vector.broadcast %123 : vector<8x16x1xf32> to vector<8x16x64xf32>
    %c0_54 = arith.constant 0 : index
    %c0_55 = arith.constant 0 : index
    %c0_56 = arith.constant 0 : index
    %125 = vector.load %arg11[%c0_54, %c0_55, %c0_56] : memref<8x16x128xf32, #tpu.memory_space<vmem>>, vector<8x16x64xf32>
    tpu.vector_store %arg11[%c0_54, %c0_55, %c0_56], %124 {strides = array<i32>} : memref<8x16x128xf32, #tpu.memory_space<vmem>>, vector<8x16x64xf32>,
    %c8 = arith.constant 8 : index
    %c0_57 = arith.constant 0 : index
    %126 = vector.load %arg5[%c8, %c0_57] : memref<16x64xf32, #tpu.memory_space<vmem>>, vector<8x64xf32>
    %c8_58 = arith.constant 8 : index
    %c0_59 = arith.constant 0 : index
    %127 = vector.load %arg6[%c8_58, %c0_59] : memref<16x64xf32, #tpu.memory_space<vmem>>, vector<8x64xf32>
    %c8_60 = arith.constant 8 : index
    %c0_61 = arith.constant 0 : index
    %128 = vector.load %arg7[%c8_60, %c0_61] : memref<16x16xf32, #tpu.memory_space<vmem>>, vector<8x16xf32>
    %c8_62 = arith.constant 8 : index
    %c0_63 = arith.constant 0 : index
    %129 = vector.load %arg8[%c8_62, %c0_63] : memref<16x16xf32, #tpu.memory_space<vmem>>, vector<8x16xf32>
    %130 = vector.shape_cast %126 : vector<8x64xf32> to vector<8x1x64xf32>
    %131 = vector.shape_cast %3 : vector<16x64xf32> to vector<1x16x64xf32>
    %132 = vector.broadcast %130 : vector<8x1x64xf32> to vector<8x16x64xf32>
    %133 = vector.broadcast %131 : vector<1x16x64xf32> to vector<8x16x64xf32>
    %134 = arith.mulf %132, %133 : vector<8x16x64xf32>
    %135 = math.exp %134 : vector<8x16x64xf32>
    %c0_64 = arith.constant 0 : index
    %c0_65 = arith.constant 0 : index
    %c64_66 = arith.constant 64 : index
    %136 = vector.load %arg9[%c0_64, %c0_65, %c64_66] : memref<8x16x128xf32, #tpu.memory_space<vmem>>, vector<8x16x64xf32>
    tpu.vector_store %arg9[%c0_64, %c0_65, %c64_66], %135 {strides = array<i32>} : memref<8x16x128xf32, #tpu.memory_space<vmem>>, vector<8x16x64xf32>,
    %137 = vector.shape_cast %128 : vector<8x16xf32> to vector<8x16x1xf32>
    %138 = vector.shape_cast %127 : vector<8x64xf32> to vector<8x1x64xf32>
    %139 = vector.broadcast %137 : vector<8x16x1xf32> to vector<8x16x64xf32>
    %140 = vector.broadcast %138 : vector<8x1x64xf32> to vector<8x16x64xf32>
    %141 = arith.mulf %139, %140 : vector<8x16x64xf32>
    %c0_67 = arith.constant 0 : index
    %c0_68 = arith.constant 0 : index
    %c64_69 = arith.constant 64 : index
    %142 = vector.load %arg10[%c0_67, %c0_68, %c64_69] : memref<8x16x128xf32, #tpu.memory_space<vmem>>, vector<8x16x64xf32>
    tpu.vector_store %arg10[%c0_67, %c0_68, %c64_69], %141 {strides = array<i32>} : memref<8x16x128xf32, #tpu.memory_space<vmem>>, vector<8x16x64xf32>,
    %143 = vector.shape_cast %129 : vector<8x16xf32> to vector<8x16x1xf32>
    %144 = vector.shape_cast %143 : vector<8x16x1xf32> to vector<8x16x1xf32>
    %145 = vector.broadcast %144 : vector<8x16x1xf32> to vector<8x16x64xf32>
    %c0_70 = arith.constant 0 : index
    %c0_71 = arith.constant 0 : index
    %c64_72 = arith.constant 64 : index
    %146 = vector.load %arg11[%c0_70, %c0_71, %c64_72] : memref<8x16x128xf32, #tpu.memory_space<vmem>>, vector<8x16x64xf32>
    tpu.vector_store %arg11[%c0_70, %c0_71, %c64_72], %145 {strides = array<i32>} : memref<8x16x128xf32, #tpu.memory_space<vmem>>, vector<8x16x64xf32>,
    %c0_i32 = arith.constant 0 : i32
    %c2_i32_73 = arith.constant 2 : i32
    %147 = arith.addi %c0_i32, %c2_i32_73 : i32
    %c1_i32_74 = arith.constant 1 : i32
    %148 = scf.for %arg13 = %c0_i32 to %147 step %c1_i32_74 iter_args(%arg14 = %104) -> (vector<16x128xf32>)  : i32 {
      %c4_i32 = arith.constant 4 : i32
      %173 = arith.muli %arg13, %c4_i32 : i32
      %c0_i32_87 = arith.constant 0 : i32
      %174 = arith.addi %173, %c0_i32_87 : i32
      %175 = arith.index_cast %174 : i32 to index
      %c0_88 = arith.constant 0 : index
      %c0_89 = arith.constant 0 : index
      %176 = vector.load %arg9[%175, %c0_88, %c0_89] : memref<8x16x128xf32, #tpu.memory_space<vmem>>, vector<1x16x128xf32>
      %177 = vector.shape_cast %176 : vector<1x16x128xf32> to vector<16x128xf32>
      %178 = arith.mulf %177, %arg14 : vector<16x128xf32>
      %179 = arith.index_cast %174 : i32 to index
      %c0_90 = arith.constant 0 : index
      %c0_91 = arith.constant 0 : index
      %180 = vector.load %arg10[%179, %c0_90, %c0_91] : memref<8x16x128xf32, #tpu.memory_space<vmem>>, vector<1x16x128xf32>
      %181 = vector.shape_cast %180 : vector<1x16x128xf32> to vector<16x128xf32>
      %182 = arith.addf %178, %181 : vector<16x128xf32>
      %183 = arith.index_cast %174 : i32 to index
      %c0_92 = arith.constant 0 : index
      %c0_93 = arith.constant 0 : index
      %184 = vector.load %arg11[%183, %c0_92, %c0_93] : memref<8x16x128xf32, #tpu.memory_space<vmem>>, vector<1x16x128xf32>
      %185 = vector.shape_cast %184 : vector<1x16x128xf32> to vector<16x128xf32>
      %186 = arith.mulf %185, %182 : vector<16x128xf32>
      %cst_94 = arith.constant dense<0.000000e+00> : vector<128xf32>
      %187 = vector.multi_reduction <add>, %186, %cst_94 [0] : vector<16x128xf32> to vector<128xf32>
      %188 = vector.shape_cast %187 : vector<128xf32> to vector<1x128xf32>
      %c0_i32_95 = arith.constant 0 : i32
      %189 = arith.addi %c0_i32_95, %174 : i32
      %190 = arith.index_cast %189 : i32 to index
      %c0_96 = arith.constant 0 : index
      %c0_97 = arith.constant 0 : index
      %191 = vector.load %arg12[%190, %c0_96, %c0_97] : memref<8x1x128xf32, #tpu.memory_space<vmem>>, vector<1x1x128xf32>
      %192 = vector.shape_cast %191 : vector<1x1x128xf32> to vector<1x128xf32>
      %193 = vector.shape_cast %188 : vector<1x128xf32> to vector<1x1x128xf32>
      tpu.vector_store %arg12[%190, %c0_96, %c0_97], %193 {strides = array<i32>} : memref<8x1x128xf32, #tpu.memory_space<vmem>>, vector<1x1x128xf32>,
      %c1_i32_98 = arith.constant 1 : i32
      %194 = arith.addi %173, %c1_i32_98 : i32
      %195 = arith.index_cast %194 : i32 to index
      %c0_99 = arith.constant 0 : index
      %c0_100 = arith.constant 0 : index
      %196 = vector.load %arg9[%195, %c0_99, %c0_100] : memref<8x16x128xf32, #tpu.memory_space<vmem>>, vector<1x16x128xf32>
      %197 = vector.shape_cast %196 : vector<1x16x128xf32> to vector<16x128xf32>
      %198 = arith.mulf %197, %182 : vector<16x128xf32>
      %199 = arith.index_cast %194 : i32 to index
      %c0_101 = arith.constant 0 : index
      %c0_102 = arith.constant 0 : index
      %200 = vector.load %arg10[%199, %c0_101, %c0_102] : memref<8x16x128xf32, #tpu.memory_space<vmem>>, vector<1x16x128xf32>
      %201 = vector.shape_cast %200 : vector<1x16x128xf32> to vector<16x128xf32>
      %202 = arith.addf %198, %201 : vector<16x128xf32>
      %203 = arith.index_cast %194 : i32 to index
      %c0_103 = arith.constant 0 : index
      %c0_104 = arith.constant 0 : index
      %204 = vector.load %arg11[%203, %c0_103, %c0_104] : memref<8x16x128xf32, #tpu.memory_space<vmem>>, vector<1x16x128xf32>
      %205 = vector.shape_cast %204 : vector<1x16x128xf32> to vector<16x128xf32>
      %206 = arith.mulf %205, %202 : vector<16x128xf32>
      %cst_105 = arith.constant dense<0.000000e+00> : vector<128xf32>
      %207 = vector.multi_reduction <add>, %206, %cst_105 [0] : vector<16x128xf32> to vector<128xf32>
      %208 = vector.shape_cast %207 : vector<128xf32> to vector<1x128xf32>
      %c0_i32_106 = arith.constant 0 : i32
      %209 = arith.addi %c0_i32_106, %194 : i32
      %210 = arith.index_cast %209 : i32 to index
      %c0_107 = arith.constant 0 : index
      %c0_108 = arith.constant 0 : index
      %211 = vector.load %arg12[%210, %c0_107, %c0_108] : memref<8x1x128xf32, #tpu.memory_space<vmem>>, vector<1x1x128xf32>
      %212 = vector.shape_cast %211 : vector<1x1x128xf32> to vector<1x128xf32>
      %213 = vector.shape_cast %208 : vector<1x128xf32> to vector<1x1x128xf32>
      tpu.vector_store %arg12[%210, %c0_107, %c0_108], %213 {strides = array<i32>} : memref<8x1x128xf32, #tpu.memory_space<vmem>>, vector<1x1x128xf32>,
      %c2_i32_109 = arith.constant 2 : i32
      %214 = arith.addi %173, %c2_i32_109 : i32
      %215 = arith.index_cast %214 : i32 to index
      %c0_110 = arith.constant 0 : index
      %c0_111 = arith.constant 0 : index
      %216 = vector.load %arg9[%215, %c0_110, %c0_111] : memref<8x16x128xf32, #tpu.memory_space<vmem>>, vector<1x16x128xf32>
      %217 = vector.shape_cast %216 : vector<1x16x128xf32> to vector<16x128xf32>
      %218 = arith.mulf %217, %202 : vector<16x128xf32>
      %219 = arith.index_cast %214 : i32 to index
      %c0_112 = arith.constant 0 : index
      %c0_113 = arith.constant 0 : index
      %220 = vector.load %arg10[%219, %c0_112, %c0_113] : memref<8x16x128xf32, #tpu.memory_space<vmem>>, vector<1x16x128xf32>
      %221 = vector.shape_cast %220 : vector<1x16x128xf32> to vector<16x128xf32>
      %222 = arith.addf %218, %221 : vector<16x128xf32>
      %223 = arith.index_cast %214 : i32 to index
      %c0_114 = arith.constant 0 : index
      %c0_115 = arith.constant 0 : index
      %224 = vector.load %arg11[%223, %c0_114, %c0_115] : memref<8x16x128xf32, #tpu.memory_space<vmem>>, vector<1x16x128xf32>
      %225 = vector.shape_cast %224 : vector<1x16x128xf32> to vector<16x128xf32>
      %226 = arith.mulf %225, %222 : vector<16x128xf32>
      %cst_116 = arith.constant dense<0.000000e+00> : vector<128xf32>
      %227 = vector.multi_reduction <add>, %226, %cst_116 [0] : vector<16x128xf32> to vector<128xf32>
      %228 = vector.shape_cast %227 : vector<128xf32> to vector<1x128xf32>
      %c0_i32_117 = arith.constant 0 : i32
      %229 = arith.addi %c0_i32_117, %214 : i32
      %230 = arith.index_cast %229 : i32 to index
      %c0_118 = arith.constant 0 : index
      %c0_119 = arith.constant 0 : index
      %231 = vector.load %arg12[%230, %c0_118, %c0_119] : memref<8x1x128xf32, #tpu.memory_space<vmem>>, vector<1x1x128xf32>
      %232 = vector.shape_cast %231 : vector<1x1x128xf32> to vector<1x128xf32>
      %233 = vector.shape_cast %228 : vector<1x128xf32> to vector<1x1x128xf32>
      tpu.vector_store %arg12[%230, %c0_118, %c0_119], %233 {strides = array<i32>} : memref<8x1x128xf32, #tpu.memory_space<vmem>>, vector<1x1x128xf32>,
      %c3_i32_120 = arith.constant 3 : i32
      %234 = arith.addi %173, %c3_i32_120 : i32
      %235 = arith.index_cast %234 : i32 to index
      %c0_121 = arith.constant 0 : index
      %c0_122 = arith.constant 0 : index
      %236 = vector.load %arg9[%235, %c0_121, %c0_122] : memref<8x16x128xf32, #tpu.memory_space<vmem>>, vector<1x16x128xf32>
      %237 = vector.shape_cast %236 : vector<1x16x128xf32> to vector<16x128xf32>
      %238 = arith.mulf %237, %222 : vector<16x128xf32>
      %239 = arith.index_cast %234 : i32 to index
      %c0_123 = arith.constant 0 : index
      %c0_124 = arith.constant 0 : index
      %240 = vector.load %arg10[%239, %c0_123, %c0_124] : memref<8x16x128xf32, #tpu.memory_space<vmem>>, vector<1x16x128xf32>
      %241 = vector.shape_cast %240 : vector<1x16x128xf32> to vector<16x128xf32>
      %242 = arith.addf %238, %241 : vector<16x128xf32>
      %243 = arith.index_cast %234 : i32 to index
      %c0_125 = arith.constant 0 : index
      %c0_126 = arith.constant 0 : index
      %244 = vector.load %arg11[%243, %c0_125, %c0_126] : memref<8x16x128xf32, #tpu.memory_space<vmem>>, vector<1x16x128xf32>
      %245 = vector.shape_cast %244 : vector<1x16x128xf32> to vector<16x128xf32>
      %246 = arith.mulf %245, %242 : vector<16x128xf32>
      %cst_127 = arith.constant dense<0.000000e+00> : vector<128xf32>
      %247 = vector.multi_reduction <add>, %246, %cst_127 [0] : vector<16x128xf32> to vector<128xf32>
      %248 = vector.shape_cast %247 : vector<128xf32> to vector<1x128xf32>
      %c0_i32_128 = arith.constant 0 : i32
      %249 = arith.addi %c0_i32_128, %234 : i32
      %250 = arith.index_cast %249 : i32 to index
      %c0_129 = arith.constant 0 : index
      %c0_130 = arith.constant 0 : index
      %251 = vector.load %arg12[%250, %c0_129, %c0_130] : memref<8x1x128xf32, #tpu.memory_space<vmem>>, vector<1x1x128xf32>
      %252 = vector.shape_cast %251 : vector<1x1x128xf32> to vector<1x128xf32>
      %253 = vector.shape_cast %248 : vector<1x128xf32> to vector<1x1x128xf32>
      tpu.vector_store %arg12[%250, %c0_129, %c0_130], %253 {strides = array<i32>} : memref<8x1x128xf32, #tpu.memory_space<vmem>>, vector<1x1x128xf32>,
      scf.yield %242 : vector<16x128xf32>
    }
    %c2_i32_75 = arith.constant 2 : i32
    %c0_76 = arith.constant 0 : index
    %c0_77 = arith.constant 0 : index
    %c0_78 = arith.constant 0 : index
    %149 = vector.load %arg12[%c0_76, %c0_77, %c0_78] : memref<8x1x128xf32, #tpu.memory_space<vmem>>, vector<8x1x128xf32>
    %150 = vector.shape_cast %149 : vector<8x1x128xf32> to vector<8x128xf32>
    %151 = vector.extract_strided_slice %150 {offsets = [0, 0], sizes = [8, 64], strides = [1, 1]} : vector<8x128xf32> to vector<8x64xf32>
    %152 = vector.extract_strided_slice %150 {offsets = [0, 64], sizes = [8, 64], strides = [1, 1]} : vector<8x128xf32> to vector<8x64xf32>
    %153 = tpu.concatenate %151, %152 in 0 : vector<8x64xf32>, vector<8x64xf32> -> vector<16x64xf32>
    %154 = vector.broadcast %9 : vector<1x64xf32> to vector<16x64xf32>
    %155 = arith.mulf %78, %154 : vector<16x64xf32>
    %156 = arith.addf %153, %155 : vector<16x64xf32>
    %157 = arith.negf %37 : vector<16x64xf32>
    %158 = math.exp %157 : vector<16x64xf32>
    %cst_79 = arith.constant 1.000000e+00 : f32
    %159 = vector.broadcast %cst_79 : f32 to vector<16x64xf32>
    %160 = arith.addf %159, %158 : vector<16x64xf32>
    %161 = arith.divf %159, %160 : vector<16x64xf32>
    %162 = arith.mulf %37, %161 : vector<16x64xf32>
    %163 = arith.mulf %156, %162 : vector<16x64xf32>
    %cst_80 = arith.constant dense<0.000000e+00> : vector<16x128xf32>
    %164 = tpu.matmul %163, %2, %cst_80 {dimension_numbers = #tpu.dot_dimension_numbers<[1], [0], [0], [1], [0, 0, 1, 1], [], []>} : vector<16x64xf32>, vector<64x128xf32>, vector<16x128xf32> -> vector<16x128xf32>
    %165 = vector.extract_strided_slice %164 {offsets = [0, 0], sizes = [8, 32], strides = [1, 1]} : vector<16x128xf32> to vector<8x32xf32>
    %c0_81 = arith.constant 0 : index
    %c0_82 = arith.constant 0 : index
    %c0_83 = arith.constant 0 : index
    %166 = vector.load %arg4[%c0_81, %c0_82, %c0_83] : memref<1x8x64xf32, #tpu.memory_space<vmem>>, vector<1x8x32xf32>
    %167 = vector.shape_cast %166 : vector<1x8x32xf32> to vector<8x32xf32>
    %168 = vector.shape_cast %165 : vector<8x32xf32> to vector<1x8x32xf32>
    tpu.vector_store %arg4[%c0_81, %c0_82, %c0_83], %168 {strides = array<i32>} : memref<1x8x64xf32, #tpu.memory_space<vmem>>, vector<1x8x32xf32>,
    %169 = vector.extract_strided_slice %164 {offsets = [8, 0], sizes = [8, 32], strides = [1, 1]} : vector<16x128xf32> to vector<8x32xf32>
    %c0_84 = arith.constant 0 : index
    %c0_85 = arith.constant 0 : index
    %c32_86 = arith.constant 32 : index
    %170 = vector.load %arg4[%c0_84, %c0_85, %c32_86] : memref<1x8x64xf32, #tpu.memory_space<vmem>>, vector<1x8x32xf32>
    %171 = vector.shape_cast %170 : vector<1x8x32xf32> to vector<8x32xf32>
    %172 = vector.shape_cast %169 : vector<8x32xf32> to vector<1x8x32xf32>
    tpu.vector_store %arg4[%c0_84, %c0_85, %c32_86], %172 {strides = array<i32>} : memref<1x8x64xf32, #tpu.memory_space<vmem>>, vector<1x8x32xf32>,
    return
  }
  func.func @transform_0(%arg0: i32) -> (i32, i32, i32) {
    %c0_i32 = arith.constant 0 : i32
    %c0_i32_0 = arith.constant 0 : i32
    %c0_i32_1 = arith.constant 0 : i32
    return %arg0, %c0_i32, %c0_i32_0 : i32, i32, i32
  }
  func.func @transform_1(%arg0: i32) -> (i32, i32) {
    %c0_i32 = arith.constant 0 : i32
    %c0_i32_0 = arith.constant 0 : i32
    %c0_i32_1 = arith.constant 0 : i32
    return %c0_i32, %c0_i32_0 : i32, i32
  }
  func.func @transform_2(%arg0: i32) -> (i32, i32) {
    %c0_i32 = arith.constant 0 : i32
    %c0_i32_0 = arith.constant 0 : i32
    %c0_i32_1 = arith.constant 0 : i32
    return %c0_i32, %c0_i32_0 : i32, i32
  }
  func.func @transform_3(%arg0: i32) -> (i32, i32, i32) {
    %c0_i32 = arith.constant 0 : i32
    %c0_i32_0 = arith.constant 0 : i32
    %c0_i32_1 = arith.constant 0 : i32
    return %arg0, %c0_i32, %c0_i32_0 : i32, i32, i32
  }
}

</mosaic_0001>

<bundles_post_ra>
// kernel: tpu_custom_call.1
= control target key start
LH: loop header
LB: loop body
LE: loop exit
PB: predicated region body
PF: predicated region fallthrough
CT: control target
= control target key end

     0   :  { %8 = vsyncpa [#allocation11], 0  ;;  %s2940_s0 = inlined_call_operand.hbm [shape: f32[1,8,64], index: 0, kind: input, shape index: {}]   ;;  %s2941_s1 = inlined_call_operand.hbm [shape: f32[160,128], index: 1, kind: input, shape index: {}]   ;;  %s2942_s2 = inlined_call_operand.hbm [shape: f32[24,128], index: 2, kind: input, shape index: {}]   ;;  %s2943_s3 = inlined_call_operand.hbm [shape: f32[1,8,64], index: 3, kind: output, shape index: {}]  }
   0x1   :  { %9 = vsyncpa [#allocation14], 0 }
   0x2   :  { %10 = vsyncpa [#allocation12], 0  ;;  %s2350_s12 = smov [#allocation13]   ;;  %s2232_s16 = scalar_lea.hbm %s2941_s1, 2560 }
   0x3   :  { %s26_s13 = sshll.u32 %s2350_s12, 4  ;;  %p2233_p0 = scmp.ne.s32.totalorder %s2941_s1, %s2232_s16  ;;  %s27_s13 = int_to_ptr.vmem [resolvable:$true] %s26_s13 }
   0x4   :  { %p2236_p1 = scmp.lt.u32.totalorder %s2232_s16, %s2941_s1 }
   0x6   :  { %p2238_p2 = pnand %p2236_p1, %p2233_p0 }
   0x8   :  { %2241 = shalt.err (!%p2238_p2)
}
   0x9   :  { %s2242_s21 = scalar_lea.vmem %s27_s13, 2560  ;;  %p2247_p4 = scmp.lt.s32.totalorder %s27_s13, %s27_s13 }
   0xa   :  { %p2243_p3 = scmp.ne.s32.totalorder %s27_s13, %s2242_s21  ;;  %p2248_p5 = scmp.lt.s32.totalorder %s2242_s21, %s2242_s21 }
   0xc   :  { %p2249_p6 = por %p2248_p5, %p2247_p4 }
   0xe   :  { %p2250_p7 = pnand %p2249_p6, %p2243_p3 }
  0x10   :  { %2253 = shalt.err (!%p2250_p7)
}
  0x11   :  { %s2351_s22 = smov 128   ;;  %s2352_s23 = smov 8  }
  0x12   :  { %32 = dma.hbm_to_vmem [thread:$0]  %s2941_s1, 2560, %s27_s13, [#allocation14], %s2351_s22, %s2351_s22, %s2352_s23  }
  0x13   :  { %s2353_s26 = smov [#allocation10]   ;;  %s2354_s28 = smov [#allocation15]  }
  0x14   :  { %s17_s27 = sshll.u32 %s2353_s26, 4  ;;  %s38_s29 = sshll.u32 %s2354_s28, 4  ;;  %s18_s27 = int_to_ptr.vmem [resolvable:$true] %s17_s27  ;;  %s39_s29 = int_to_ptr.vmem [resolvable:$true] %s38_s29 }
  0x15   :  { %s2254_s5 = scalar_lea.hbm %s2940_s0, 128 }
  0x16   :  { %p2255_p8 = scmp.ne.s32.totalorder %s2940_s0, %s2254_s5  ;;  %p2258_p9 = scmp.lt.u32.totalorder %s2254_s5, %s2940_s0 }
  0x18   :  { %p2260_p10 = pnand %p2258_p9, %p2255_p8 }
  0x1a   :  { %2263 = shalt.err (!%p2260_p10)
}
  0x1b   :  { %s2264_s1 = scalar_lea.vmem %s18_s27, 128  ;;  %p2269_p12 = scmp.lt.s32.totalorder %s18_s27, %s18_s27 }
  0x1c   :  { %p2265_p11 = scmp.ne.s32.totalorder %s18_s27, %s2264_s1  ;;  %p2270_p13 = scmp.lt.s32.totalorder %s2264_s1, %s2264_s1 }
  0x1e   :  { %p2271_p0 = por %p2270_p13, %p2269_p12 }
  0x20   :  { %p2272_p1 = pnand %p2271_p0, %p2265_p11 }
  0x22   :  { %2275 = shalt.err (!%p2272_p1)
}
  0x23   :  { %20 = dma.hbm_to_vmem [thread:$0]  %s2940_s0, 128, %s18_s27, [#allocation11]  }
  0x24   :  { %s2276_s14 = scalar_lea.hbm %s2942_s2, 384 }
  0x25   :  { %p2277_p2 = scmp.ne.s32.totalorder %s2942_s2, %s2276_s14  ;;  %p2280_p3 = scmp.lt.u32.totalorder %s2276_s14, %s2942_s2 }
  0x27   :  { %p2282_p4 = pnand %p2280_p3, %p2277_p2 }
  0x29   :  { %2285 = shalt.err (!%p2282_p4)
}
  0x2a   :  { %s2286_s19 = scalar_lea.vmem %s39_s29, 384  ;;  %p2291_p6 = scmp.lt.s32.totalorder %s39_s29, %s39_s29 }
  0x2b   :  { %p2287_p5 = scmp.ne.s32.totalorder %s39_s29, %s2286_s19  ;;  %p2292_p7 = scmp.lt.s32.totalorder %s2286_s19, %s2286_s19 }
  0x2d   :  { %p2293_p8 = por %p2292_p7, %p2291_p6 }
  0x2f   :  { %p2294_p9 = pnand %p2293_p8, %p2287_p5 }
  0x31   :  { %2297 = shalt.err (!%p2294_p9)
}
  0x32   :  { %44 = dma.hbm_to_vmem [thread:$0]  %s2942_s2, 384, %s39_s29, [#allocation14], %s2351_s22, %s2351_s22, %s2352_s23  }
  0x33   :  { %2332 = dma.done.wait [#allocation11], 128  }
  0x34   :  { %2333 = vsyncadd [#allocation11], 4294967168 }
  0x35   :  { %2334 = dma.done.wait [#allocation14], 2944  }
  0x36   :  { %2335 = vsyncadd [#allocation14], 4294964352  ;;  %v2423_v0 = vld [vmem:[#allocation13 + $0x60] sm:$0xff]  ;;  %v2425_v1 = vld [vmem:[#allocation13 + $0x68] sm:$0xff]  ;;  %s2355_s2 = smov 96   ;;  %vm84_vm0 = vcmask 261120   ;;  %v205_v44 = vlaneseq }
  0x37   :  { %v2427_v2 = vld [vmem:[#allocation13 + $0x70] sm:$0xff]  ;;  %v2429_v3 = vld [vmem:[#allocation13 + $0x78] sm:$0xff]  ;;  %v2431_v4 = vld [vmem:[#allocation13 + $0x80] sm:$0xff]  ;;  %s2356_s21 = smov 64   ;;  %vm315_vm7 = vcmask 523264   ;;  %s2357_s22 = smov 48  }
  0x38   :  { %v2433_v5 = vld [vmem:[#allocation13 + $0x88] sm:$0xff]  ;;  %v2435_v6 = vld [vmem:[#allocation13 + $0x90] sm:$0xff]  ;;  %v2437_v7 = vld [vmem:[#allocation13 + $0x98] sm:$0xff]  ;;  %v2450_v45 = vshrl.u32 %v205_v44, 7  ;;  %vm453_vm12 = vcmask 130048   ;;  %vm1142_vm13 = vcmask 1048064  }
  0x39   :  { %v79_v8 = vld [vmem:[#allocation10] sm:$0xff]  ;;  %v2443_v22 = vld [vmem:[#allocation15 + $0x14] ss:$0 sm:$0xff]  ;;  %v54_v23 = vld [vmem:[#allocation13] sm:$0xff]  ;;  %s2852_s23 = smov 0  }
  0x3a   :  { %81 = vrot.lane.b32.xlu0 %v79_v8, %s2355_s2  ;;  %v85_v9 = vsel %vm84_vm0, %v79_v8, 0.0  ;;  %v55_v24 = vld [vmem:[#allocation13 + $0x8] sm:$0xff]  ;;  %v56_v26 = vld [vmem:[#allocation13 + $0x10] sm:$0xff]  ;;  %v57_v27 = vld [vmem:[#allocation13 + $0x18] sm:$0xff]  ;;  %v2453_v46 = vsub.s32 3, %v2450_v45  ;;  %v2457_v49 = vsub.s32 2, %v2450_v45 }
  0x3b   :  { %v2063_v25 = vpack.c.bf16 %v55_v24, %v54_v23  ;;  %v2067_v28 = vpack.c.bf16 %v57_v27, %v56_v26  ;;  %v76_v47 = vld [vmem:[#allocation15 + $0x10] sm:$0xf]  ;;  %vm226_vm1 = vcmp.lt.s32.totalorder %v2450_v45, 1  ;;  %vm250_vm2 = vcmp.lt.s32.totalorder %v2450_v45, 2 }
  0x3c   :  { %v210_v48 = vrot.slane %v76_v47, %v2453_v46  ;;  %vm223_vm3 = vcmp.ge.s32.totalorder %v2450_v45, 1  ;;  %v234_v57 = vrot.slane %v76_v47, %v2457_v49  ;;  %vm274_vm4 = vcmp.lt.s32.totalorder %v2450_v45, 3 }
  0x3d   :  { %2064 = vmatprep.subr.bf16.mxu0 %v2063_v25  ;;  %vm247_vm5 = vcmp.ge.s32.totalorder %v2450_v45, 2  ;;  %vm271_vm6 = vcmp.ge.s32.totalorder %v2450_v45, 3 }
  0x3e   :  { %2066 = vmatpush3.bf16.msra.mxu0 %v2063_v25 }
  0x3f   :  { %2068 = vmatprep.subr.bf16.mxu0 %v2067_v28 }
  0x42   :  { %2070 = vmatpush3.bf16.msra.mxu0 %v2067_v28  ;;  %v58_v28 = vld [vmem:[#allocation13 + $0x20] sm:$0xff] }
  0x59   :  { %86 = vadd.xlane.f32.xlu0 %v85_v9 }
  0xac   :  { %v82_v10 = vpop.permute.xlu0 %81 }
  0xad   :  { %v88_v11 = vsel %vm84_vm0, %v82_v10, 0.0 }
  0xae   :  { %89 = vadd.xlane.f32.xlu1 %v88_v11 }
  0xe6   :  { %v87_v12 = vpop.xlane.xlu0 %86 }
  0xe7   :  { %v92_v13 = vmul.f32 0.03125, %v87_v12 }
  0xe9   :  { %v94_v14 = vsub.f32 %v79_v8, %v92_v13 }
  0xeb   :  { %v96_v15 = vmul.f32 %v94_v14, %v94_v14 }
  0xed   :  { %v98_v16 = vsel %vm84_vm0, %v96_v15, 0.0 }
  0xee   :  { %99 = vadd.xlane.f32.xlu1 %v98_v16 }
 0x13b   :  { %v90_v17 = vpop.xlane.xlu1 %89 }
 0x13c   :  { %v93_v18 = vmul.f32 0.03125, %v90_v17 }
 0x13e   :  { %v95_v19 = vsub.f32 %v82_v10, %v93_v18  ;;  %v2482_v10 = vsub.s32 1, %v2450_v45  ;;  %v2490_v18 = vsub.s32 0, %v2450_v45 }
 0x140   :  { %v97_v20 = vmul.f32 %v95_v19, %v95_v19  ;;  %v258_v16 = vrot.slane %v76_v47, %v2482_v10  ;;  %v282_v23 = vrot.slane %v76_v47, %v2490_v18 }
 0x142   :  { %v101_v21 = vsel %vm84_vm0, %v97_v20, 0.0 }
 0x143   :  { %102 = vadd.xlane.f32.xlu1 %v101_v21 }
 0x154   :  { %119 = vrot.lane.b32.xlu1 %v2443_v22, %s2355_s2 }
 0x17b   :  { %v100_v29 = vpop.xlane.xlu1 %99 }
 0x17c   :  { %v104_v30 = vmul.f32 0.03125, %v100_v29  ;;  %v59_v29 = vld [vmem:[#allocation13 + $0x28] sm:$0xff] }
 0x17e   :  { %v106_v31 = vadd.f32 1e-05, %v104_v30  ;;  %v60_v30 = vld [vmem:[#allocation13 + $0x30] sm:$0xff] }
 0x180   :  { %2140 = vrsqrt.f32 %v106_v31  ;;  %v2071_v31 = vpack.c.bf16 %v59_v29, %v58_v28 }
 0x182   :  { %2072 = vmatprep.subr.bf16.mxu1 %v2071_v31 }
 0x183   :  { %2074 = vmatpush3.bf16.msra.mxu1 %v2071_v31 }
 0x18a   :  { %v2141_v32 = vpop.eup %2140 }
 0x18b   :  { %v110_v33 = vmul.f32 %v2141_v32, %v94_v14  ;;  %v61_v32 = vld [vmem:[#allocation13 + $0x38] sm:$0xff] }
 0x18d   :  { %v116_v37 = vmul.f32 %v2443_v22, %v110_v33  ;;  %v2075_v33 = vpack.c.bf16 %v61_v32, %v60_v30 }
 0x18f   :  { %2076 = vmatprep.subr.bf16.mxu1 %v2075_v33 }
 0x190   :  { %2078 = vmatpush3.bf16.msra.mxu1 %v2075_v33 }
 0x1d0   :  { %v103_v34 = vpop.xlane.xlu1 %102 }
 0x1d1   :  { %v105_v35 = vmul.f32 0.03125, %v103_v34  ;;  %v62_v34 = vld [vmem:[#allocation13 + $0x40] sm:$0xff] }
 0x1d3   :  { %v107_v36 = vadd.f32 1e-05, %v105_v35  ;;  %v63_v35 = vld [vmem:[#allocation13 + $0x48] sm:$0xff] }
 0x1d4   :  { %v120_v38 = vpop.permute.xlu1 %119 }
 0x1d5   :  { %2142 = vrsqrt.f32 %v107_v36  ;;  %v122_v39 = vadd.f32 %v120_v38, %v116_v37  ;;  %v2079_v36 = vpack.c.bf16 %v63_v35, %v62_v34 }
 0x1d7   :  { %2022 = vmatprep.mubr.msk.f32.mxu0 %vm84_vm0, %v122_v39  ;;  %2080 = vmatprep.subr.bf16.mxu1 %v2079_v36 }
 0x1d8   :  { %2082 = vmatpush3.bf16.msra.mxu1 %v2079_v36 }
 0x1df   :  { %v2143_v40 = vpop.eup %2142 }
 0x1e0   :  { %v111_v41 = vmul.f32 %v2143_v40, %v95_v19 }
 0x1e2   :  { %v117_v42 = vmul.f32 %v2443_v22, %v111_v41 }
 0x1e4   :  { %v123_v43 = vadd.f32 %v120_v38, %v117_v42 }
 0x1e6   :  { %2023 = vmatmul.mubr.msk.f32.vlgmr.msra.gmra.mrb[0].mxu0 %vm84_vm0, %v123_v43 }
 0x2b9   :  { %v2459_v50 = vpop.f32.mrb[0].mxu0 }
 0x2ba   :  { %v225_v51 = vrot.slane %v2459_v50, 7  ;;  %v249_v52 = vrot.slane %v2459_v50, 6  ;;  %v2464_v53 = vpop.f32.mrb[1].mxu0  ;;  %v212_v54 = vmul.f32 %v2459_v50, %v210_v48  ;;  %v273_v58 = vrot.slane %v2459_v50, 5 }
 0x2bb   :  { %v224_v55 = vrot.slane %v2464_v53, 7  ;;  %v248_v56 = vrot.slane %v2464_v53, 6  ;;  %v272_v59 = vrot.slane %v2464_v53, 5  ;;  %v211_v8 = vmul.f32 %v210_v48, %v2464_v53 }
 0x2bc   :  { %217 = vrot.lane.b32.xlu1 %v212_v54, %s2356_s21 }
 0x2bd   :  { %v228_v60 = vsel %vm226_vm1, %v225_v51, %v224_v55  ;;  %v227_v61 = vsel %vm226_vm1, %v224_v55, %v225_v51  ;;  %v252_v62 = vsel %vm250_vm2, %v249_v52, %v248_v56  ;;  %v251_v63 = vsel %vm250_vm2, %v248_v56, %v249_v52 }
 0x2be   :  { %v229_v9 = vsel %vm223_vm3, %v228_v60, 0.0  ;;  %v230_v12 = vsel %vm223_vm3, %v227_v61, 0.0  ;;  %v276_v13 = vsel %vm274_vm4, %v273_v58, %v272_v59  ;;  %v275_v14 = vsel %vm274_vm4, %v272_v59, %v273_v58 }
 0x2bf   :  { %v235_v11 = vmul.f32 %v234_v57, %v229_v9  ;;  %v236_v15 = vmul.f32 %v234_v57, %v230_v12  ;;  %v253_v17 = vsel %vm247_vm5, %v252_v62, 0.0  ;;  %v254_v20 = vsel %vm247_vm5, %v251_v63, 0.0  ;;  %v64_v62 = vld [vmem:[#allocation13 + $0x50] sm:$0xff]  ;;  %v65_v63 = vld [vmem:[#allocation13 + $0x58] sm:$0xff] }
 0x2c0   :  { %215 = vrot.lane.b32.xlu1 %v211_v8, %s2356_s21  ;;  %v259_v19 = vmul.f32 %v258_v16, %v253_v17  ;;  %v260_v21 = vmul.f32 %v258_v16, %v254_v20  ;;  %v277_v24 = vsel %vm271_vm6, %v276_v13, 0.0  ;;  %v278_v26 = vsel %vm271_vm6, %v275_v14, 0.0  ;;  %v2510_v17 = vld [vmem:[#allocation15 + $0x15] ss:$0 sm:$0xff] }
 0x2c1   :  { %239 = vrot.lane.b32.xlu0 %v235_v11, %s2356_s21  ;;  %v283_v25 = vmul.f32 %v282_v23, %v277_v24  ;;  %v284_v27 = vmul.f32 %v282_v23, %v278_v26  ;;  %v2083_v8 = vpack.c.bf16 %v65_v63, %v64_v62 }
 0x2c3   :  { %2084 = vmatprep.subr.bf16.mxu1 %v2083_v8 }
 0x2c4   :  { %241 = vrot.lane.b32.xlu1 %v236_v15, %s2356_s21  ;;  %2086 = vmatpush3.bf16.msra.mxu1 %v2083_v8 }
 0x2c8   :  { %263 = vrot.lane.b32.xlu1 %v259_v19, %s2356_s21 }
 0x2cc   :  { %265 = vrot.lane.b32.xlu1 %v260_v21, %s2356_s21 }
 0x2d0   :  { %287 = vrot.lane.b32.xlu1 %v283_v25, %s2356_s21 }
 0x2d4   :  { %289 = vrot.lane.b32.xlu1 %v284_v27, %s2356_s21 }
 0x32e   :  { %v218_v37 = vpop.permute.xlu1 %217 }
 0x32f   :  { %v222_v47 = vadd.f32 %v2443_v22, %v218_v37 }
 0x332   :  { %v216_v38 = vpop.permute.xlu1 %215 }
 0x333   :  { %v221_v41 = vadd.f32 %v2443_v22, %v216_v38  ;;  %v240_v42 = vpop.permute.xlu0 %239 }
 0x335   :  { %v245_v44 = vadd.f32 %v240_v42, %v221_v41 }
 0x336   :  { %v242_v39 = vpop.permute.xlu1 %241 }
 0x337   :  { %v246_v52 = vadd.f32 %v242_v39, %v222_v47 }
 0x33a   :  { %v264_v40 = vpop.permute.xlu1 %263 }
 0x33b   :  { %v269_v48 = vadd.f32 %v264_v40, %v245_v44 }
 0x33e   :  { %v266_v43 = vpop.permute.xlu1 %265 }
 0x33f   :  { %v270_v55 = vadd.f32 %v266_v43, %v246_v52 }
 0x342   :  { %v288_v51 = vpop.permute.xlu1 %287 }
 0x343   :  { %v293_v54 = vadd.f32 %v288_v51, %v269_v48  ;;  %v2358_v51 = vmov 1966171168  }
 0x344   :  { %v471_v52 = vunpack.c.l.s4 %v2358_v51 }
 0x345   :  { %v1925_v56 = vmul.f32 -1.442695, %v293_v54 }
 0x346   :  { %v290_v57 = vpop.permute.xlu1 %289 }
 0x347   :  { %2144 = vpow2.f32 %v1925_v56  ;;  %v294_v58 = vadd.f32 %v290_v57, %v270_v55 }
 0x349   :  { %v1926_v59 = vmul.f32 -1.442695, %v294_v58 }
 0x34b   :  { %2146 = vpow2.f32 %v1926_v59 }
 0x351   :  { %v2145_v60 = vpop.eup %2144 }
 0x352   :  { %v301_v61 = vadd.f32 1.0, %v2145_v60  ;;  %v472_v60 = vunpack.c.0.s8 %v471_v52 }
 0x354   :  { %2148 = vrcp.f32 %v301_v61  ;;  %v2521_v8 = vsub.s32 %v472_v60, %v2450_v45 }
 0x355   :  { %v2147_v9 = vpop.eup %2146 }
 0x356   :  { %v302_v11 = vadd.f32 1.0, %v2147_v9 }
 0x358   :  { %2150 = vrcp.f32 %v302_v11 }
 0x35e   :  { %v2149_v22 = vpop.eup %2148 }
 0x35f   :  { %v2500_v12 = vmul.f32 %v2149_v22, %v293_v54 }
 0x361   :  { %311 = vrot.lane.b32.xlu0 %v2500_v12, %s2356_s21 }
 0x362   :  { %v2151_v13 = vpop.eup %2150 }
 0x363   :  { %v2504_v14 = vmul.f32 %v2151_v13, %v294_v58 }
 0x365   :  { %313 = vrot.lane.b32.xlu1 %v2504_v14, %s2356_s21 }
 0x3d3   :  { %v312_v15 = vpop.permute.xlu0 %311 }
 0x3d4   :  { %2041 = vmatprep.mubr.msk.f32.mxu1 %vm315_vm7, %v312_v15 }
 0x3d7   :  { %v314_v16 = vpop.permute.xlu1 %313 }
 0x3d8   :  { %2042 = vmatmul.mubr.msk.f32.vlgmr.msra.gmra.mrb[0].mxu1 %vm315_vm7, %v314_v16 }
 0x4ab   :  { %v2043_v19 = vpop.f32.mrb[0].mxu1 }
 0x4ac   :  { %v400_v20 = vadd.f32 %v2043_v19, %v2510_v17  ;;  %449 = vrot.lane.b32.xlu1 %v2043_v19, %s2356_s21  ;;  %v386_v21 = vpop.f32.mrb[1].mxu1 }
 0x4ad   :  { %v399_v23 = vadd.f32 %v2510_v17, %v386_v21  ;;  %447 = vrot.lane.b32.xlu0 %v386_v21, %s2356_s21 }
 0x4ae   :  { %v408_v24 = vand.u32 2147483647, %v400_v20  ;;  %v402_v44 = vmax.f32 %v400_v20, 0.0  ;;  %vm404_vm10 = vcmp.ne.f32.partialorder %v400_v20, %v400_v20 }
 0x4af   :  { %v407_v25 = vand.u32 2147483647, %v399_v23  ;;  %v401_v55 = vmax.f32 %v399_v23, 0.0  ;;  %vm403_vm11 = vcmp.ne.f32.partialorder %v399_v23, %v399_v23 }
 0x4b0   :  { %v410_v26 = vsub.f32 0.0, %v408_v24  ;;  %458 = vrot.lane.b32.xlu1 %v2043_v19, %s2357_s22  ;;  %v2529_v24 = vld [vmem:[#allocation15] sm:$0xff] }
 0x4b1   :  { %v409_v27 = vsub.f32 0.0, %v407_v25  ;;  %456 = vrot.lane.b32.xlu0 %v386_v21, %s2357_s22 }
 0x4b2   :  { %v413_v28 = vmul.f32 1.442695, %v410_v26 }
 0x4b3   :  { %v411_v29 = vmul.f32 1.442695, %v409_v27 }
 0x4b4   :  { %2152 = vpow2.f32 %v413_v28 }
 0x4b5   :  { %2154 = vpow2.f32 %v411_v29 }
 0x4be   :  { %v2153_v30 = vpop.eup %2152 }
 0x4bf   :  { %v2155_v31 = vpop.eup %2154  ;;  %v424_v32 = vadd.f32 1.0, %v2153_v30  ;;  %v427_v34 = vmul.f32 -0.5, %v2153_v30  ;;  %v430_v37 = vand.u32 2147483647, %v2153_v30 }
 0x4c0   :  { %v415_v33 = vadd.f32 1.0, %v2155_v31  ;;  %v418_v35 = vmul.f32 -0.5, %v2155_v31  ;;  %v421_v39 = vand.u32 2147483647, %v2155_v31 }
 0x4c1   :  { %2156 = vlog2.f32 %v424_v32  ;;  %v428_v36 = vadd.f32 1.0, %v427_v34  ;;  %vm431_vm8 = vcmp.lt.f32.partialorder %v430_v37, 0.0004427343 }
 0x4c2   :  { %2158 = vlog2.f32 %v415_v33  ;;  %v419_v38 = vadd.f32 1.0, %v418_v35  ;;  %vm422_vm9 = vcmp.lt.f32.partialorder %v421_v39, 0.0004427343 }
 0x4c3   :  { %v429_v43 = vmul.f32 %v2153_v30, %v428_v36 }
 0x4c4   :  { %v420_v48 = vmul.f32 %v2155_v31, %v419_v38 }
 0x4cb   :  { %v2157_v40 = vpop.eup %2156 }
 0x4cc   :  { %v2159_v41 = vpop.eup %2158  ;;  %v426_v42 = vmul.f32 0.6931472, %v2157_v40 }
 0x4cd   :  { %v417_v47 = vmul.f32 0.6931472, %v2159_v41 }
 0x4ce   :  { %v432_v54 = vsel %vm431_vm8, %v429_v43, %v426_v42 }
 0x4cf   :  { %v434_v56 = vadd.f32 %v432_v54, %v402_v44  ;;  %v423_v57 = vsel %vm422_vm9, %v420_v48, %v417_v47 }
 0x4d0   :  { %v433_v58 = vadd.f32 %v423_v57, %v401_v55 }
 0x4d1   :  { %v436_v59 = vsel %vm404_vm10, %v400_v20, %v434_v56 }
 0x4d2   :  { %438 = vst.msk [vmem:[#allocation2 + $0x8] sm:$0xff] %vm315_vm7, %v436_v59  ;;  %v442_v61 = vmul.f32 %v436_v59, %v314_v16  ;;  %v435_v62 = vsel %vm403_vm11, %v399_v23, %v433_v58  ;;  %v2527_v23 = vld [vmem:[#allocation15 + $0x8] sm:$0xff] }
 0x4d3   :  { %437 = vst.msk [vmem:[#allocation2] sm:$0xff] %vm315_vm7, %v435_v62  ;;  %v441_v63 = vmul.f32 %v435_v62, %v312_v15 }
 0x4d4   :  { %444 = vst.msk [vmem:[#allocation3 + $0x8] sm:$0xff] %vm315_vm7, %v442_v61 }
 0x4d5   :  { %443 = vst.msk [vmem:[#allocation3] sm:$0xff] %vm315_vm7, %v441_v63 }
 0x4d9   :  { %v936_v9 = vld [vmem:[#allocation2 + $0x8] sm:$0xff] }
 0x4da   :  { %v948_v11 = vrot.slane %v936_v9, %v2521_v8  ;;  %v941_v22 = vcombine.high %v936_v9, %v936_v9  ;;  %v464_v13 = vld [vmem:[#allocation2] sm:$0xff] }
 0x4db   :  { %v476_v19 = vrot.slane %v464_v13, %v2521_v8  ;;  %v469_v20 = vcombine.high %v464_v13, %v464_v13 }
 0x4dc   :  { %v964_v16 = vrot.slane %v948_v11, %v2521_v8  ;;  %v956_v21 = vcombine.high %v948_v11, %v948_v11  ;;  %v955_v15 = vrot.slane %v941_v22, %v2521_v8 }
 0x4dd   :  { %v2532_v25 = vrot.slane %v476_v19, %v2521_v8  ;;  %v484_v26 = vcombine.high %v476_v19, %v476_v19  ;;  %v2543_v34 = vrot.slane %v469_v20, %v2521_v8 }
 0x4de   :  { %v993_v27 = vrot.slane %v964_v16, %v2490_v18  ;;  %v978_v28 = vrot.slane %v956_v21, %v2521_v8  ;;  %v986_v29 = vcombine.high %v964_v16, %v964_v16  ;;  %v971_v30 = vrot.slane %v955_v15, %v2521_v8 }
 0x4df   :  { %v957_v31 = vcombine.high %v955_v15, %v955_v15  ;;  %v521_v32 = vrot.slane %v2532_v25, %v2490_v18  ;;  %v2540_v33 = vrot.slane %v484_v26, %v2521_v8  ;;  %v514_v16 = vcombine.high %v2532_v25, %v2532_v25 }
 0x4e0   :  { %v1031_v35 = vmul.f32 %v993_v27, %v2527_v23  ;;  %v1030_v36 = vmul.f32 %v993_v27, %v2529_v24  ;;  %v997_v37 = vrot.slane %v978_v28, %v2490_v18  ;;  %v1001_v38 = vrot.slane %v986_v29, %v2490_v18 }
 0x4e1   :  { %v1009_v39 = vrot.slane %v971_v30, %v2490_v18  ;;  %v988_v40 = vcombine.high %v978_v28, %v978_v28  ;;  %v985_v41 = vrot.slane %v957_v31, %v2521_v8  ;;  %v987_v42 = vcombine.high %v971_v30, %v971_v30 }
 0x4e2   :  { %v1048_v43 = vmul.f32 1.442695, %v1031_v35  ;;  %v1046_v44 = vmul.f32 1.442695, %v1030_v36  ;;  %v1033_v47 = vmul.f32 %v997_v37, %v2527_v23  ;;  %v1032_v48 = vmul.f32 %v997_v37, %v2529_v24 }
 0x4e3   :  { %v1035_v51 = vmul.f32 %v1001_v38, %v2527_v23  ;;  %v1034_v52 = vmul.f32 %v1001_v38, %v2529_v24  ;;  %v1039_v54 = vmul.f32 %v1009_v39, %v2527_v23  ;;  %v1038_v55 = vmul.f32 %v1009_v39, %v2529_v24 }
 0x4e4   :  { %2160 = vpow2.f32 %v1048_v43  ;;  %v1052_v56 = vmul.f32 1.442695, %v1033_v47  ;;  %v1050_v57 = vmul.f32 1.442695, %v1032_v48  ;;  %v1005_v58 = vrot.slane %v988_v40, %v2490_v18 }
 0x4e5   :  { %2162 = vpow2.f32 %v1046_v44  ;;  %v1056_v59 = vmul.f32 1.442695, %v1035_v51  ;;  %v1054_v60 = vmul.f32 1.442695, %v1034_v52  ;;  %v1064_v61 = vmul.f32 1.442695, %v1039_v54 }
 0x4e6   :  { %2164 = vpow2.f32 %v1052_v56  ;;  %v1062_v62 = vmul.f32 1.442695, %v1038_v55  ;;  %v1037_v63 = vmul.f32 %v1005_v58, %v2527_v23  ;;  %v1036_v9 = vmul.f32 %v1005_v58, %v2529_v24 }
 0x4e7   :  { %2166 = vpow2.f32 %v1050_v57  ;;  %v1013_v11 = vrot.slane %v985_v41, %v2490_v18  ;;  %v1017_v22 = vrot.slane %v987_v42, %v2490_v18  ;;  %v989_v13 = vcombine.high %v985_v41, %v985_v41 }
 0x4e8   :  { %2168 = vpow2.f32 %v1056_v59  ;;  %v1060_v19 = vmul.f32 1.442695, %v1037_v63  ;;  %v1058_v20 = vmul.f32 1.442695, %v1036_v9  ;;  %v559_v29 = vmul.f32 %v521_v32, %v2527_v23 }
 0x4e9   :  { %2170 = vpow2.f32 %v1054_v60  ;;  %v1041_v21 = vmul.f32 %v1013_v11, %v2527_v23  ;;  %v1040_v15 = vmul.f32 %v1013_v11, %v2529_v24  ;;  %v1043_v26 = vmul.f32 %v1017_v22, %v2527_v23 }
 0x4ea   :  { %2172 = vpow2.f32 %v1064_v61  ;;  %v1042_v27 = vmul.f32 %v1017_v22, %v2529_v24  ;;  %v1021_v28 = vrot.slane %v989_v13, %v2490_v18  ;;  %v558_v38 = vmul.f32 %v521_v32, %v2529_v24 }
 0x4eb   :  { %2174 = vpow2.f32 %v1062_v62  ;;  %v1068_v30 = vmul.f32 1.442695, %v1041_v21  ;;  %v1066_v31 = vmul.f32 1.442695, %v1040_v15  ;;  %v1072_v35 = vmul.f32 1.442695, %v1043_v26 }
 0x4ec   :  { %2176 = vpow2.f32 %v1060_v19  ;;  %v1070_v25 = vmul.f32 1.442695, %v1042_v27  ;;  %v1045_v36 = vmul.f32 %v1021_v28, %v2527_v23  ;;  %v1044_v37 = vmul.f32 %v1021_v28, %v2529_v24 }
 0x4ed   :  { %2178 = vpow2.f32 %v1058_v20  ;;  %v525_v39 = vrot.slane %v2540_v33, %v2490_v18  ;;  %v529_v40 = vrot.slane %v514_v16, %v2490_v18  ;;  %v499_v43 = vrot.slane %v2543_v34, %v2521_v8 }
 0x4ee   :  { %v2161_v41 = vpop.eup %2160  ;;  %2180 = vpow2.f32 %v1068_v30  ;;  %v1076_v42 = vmul.f32 1.442695, %v1045_v36  ;;  %v1074_v47 = vmul.f32 1.442695, %v1044_v37  ;;  %v576_v52 = vmul.f32 1.442695, %v559_v29 }
 0x4ef   :  { %v2163_v44 = vpop.eup %2162  ;;  %1096 = vrot.lane.b32.xlu1 %v2161_v41, %s2356_s21  ;;  %2182 = vpow2.f32 %v1066_v31  ;;  %v561_v48 = vmul.f32 %v525_v39, %v2527_v23  ;;  %v560_v32 = vmul.f32 %v525_v39, %v2529_v24  ;;  %v563_v54 = vmul.f32 %v529_v40, %v2527_v23 }
 0x4f0   :  { %v2165_v51 = vpop.eup %2164  ;;  %1094 = vrot.lane.b32.xlu0 %v2163_v44, %s2356_s21  ;;  %2184 = vpow2.f32 %v1072_v35  ;;  %v537_v55 = vrot.slane %v499_v43, %v2490_v18  ;;  %v574_v57 = vmul.f32 1.442695, %v558_v38  ;;  %v562_v58 = vmul.f32 %v529_v40, %v2529_v24 }
 0x4f1   :  { %v2167_v56 = vpop.eup %2166  ;;  %2186 = vpow2.f32 %v1070_v25  ;;  %v516_v59 = vcombine.high %v2540_v33, %v2540_v33  ;;  %v580_v61 = vmul.f32 1.442695, %v561_v48  ;;  %v578_v62 = vmul.f32 1.442695, %v560_v32 }
 0x4f2   :  { %v2169_v60 = vpop.eup %2168  ;;  %2188 = vpow2.f32 %v1076_v42  ;;  %v567_v63 = vmul.f32 %v537_v55, %v2527_v23  ;;  %v566_v11 = vmul.f32 %v537_v55, %v2529_v24  ;;  %v485_v13 = vcombine.high %v2543_v34, %v2543_v34 }
 0x4f3   :  { %v2171_v9 = vpop.eup %2170  ;;  %1100 = vrot.lane.b32.xlu1 %v2165_v51, %s2356_s21  ;;  %2190 = vpow2.f32 %v1074_v47  ;;  %v533_v22 = vrot.slane %v516_v59, %v2490_v18  ;;  %v584_v33 = vmul.f32 1.442695, %v563_v54  ;;  %v515_v20 = vcombine.high %v499_v43, %v499_v43 }
 0x4f4   :  { %v2173_v19 = vpop.eup %2172  ;;  %1098 = vrot.lane.b32.xlu0 %v2167_v56, %s2356_s21  ;;  %2192 = vpow2.f32 %v576_v52  ;;  %v582_v21 = vmul.f32 1.442695, %v562_v58  ;;  %v592_v28 = vmul.f32 1.442695, %v567_v63  ;;  %v513_v29 = vrot.slane %v485_v13, %v2521_v8 }
 0x4f5   :  { %v2175_v16 = vpop.eup %2174  ;;  %2194 = vpow2.f32 %v574_v57  ;;  %v565_v15 = vmul.f32 %v533_v22, %v2527_v23  ;;  %v564_v26 = vmul.f32 %v533_v22, %v2529_v24  ;;  %v545_v34 = vrot.slane %v515_v20, %v2490_v18 }
 0x4f6   :  { %v2177_v27 = vpop.eup %2176  ;;  %2196 = vpow2.f32 %v580_v61  ;;  %v590_v31 = vmul.f32 1.442695, %v566_v11  ;;  %v541_v36 = vrot.slane %v513_v29, %v2490_v18  ;;  %v517_v41 = vcombine.high %v513_v29, %v513_v29 }
 0x4f7   :  { %v2179_v30 = vpop.eup %2178  ;;  %1104 = vrot.lane.b32.xlu1 %v2169_v60, %s2356_s21  ;;  %2198 = vpow2.f32 %v578_v62  ;;  %v588_v25 = vmul.f32 1.442695, %v565_v15  ;;  %v571_v37 = vmul.f32 %v545_v34, %v2527_v23  ;;  %v586_v39 = vmul.f32 1.442695, %v564_v26 }
 0x4f8   :  { %v2181_v35 = vpop.eup %2180  ;;  %1102 = vrot.lane.b32.xlu0 %v2171_v9, %s2356_s21  ;;  %2200 = vpow2.f32 %v584_v33  ;;  %v570_v40 = vmul.f32 %v545_v34, %v2529_v24  ;;  %v569_v43 = vmul.f32 %v541_v36, %v2527_v23  ;;  %v568_v44 = vmul.f32 %v541_v36, %v2529_v24 }
 0x4f9   :  { %v2183_v38 = vpop.eup %2182  ;;  %2202 = vpow2.f32 %v582_v21  ;;  %v549_v48 = vrot.slane %v517_v41, %v2490_v18  ;;  %v600_v54 = vmul.f32 1.442695, %v571_v37  ;;  %v2637_v36 = vsub.s32 7, %v2450_v45 }
 0x4fa   :  { %v2185_v42 = vpop.eup %2184  ;;  %2204 = vpow2.f32 %v592_v28  ;;  %v596_v51 = vmul.f32 1.442695, %v569_v43  ;;  %v594_v52 = vmul.f32 1.442695, %v568_v44  ;;  %v598_v56 = vmul.f32 1.442695, %v570_v40 }
 0x4fb   :  { %v2187_v47 = vpop.eup %2186  ;;  %1112 = vrot.lane.b32.xlu1 %v2173_v19, %s2356_s21  ;;  %2206 = vpow2.f32 %v590_v31  ;;  %v573_v57 = vmul.f32 %v549_v48, %v2527_v23  ;;  %v572_v58 = vmul.f32 %v549_v48, %v2529_v24  ;;  %v2645_v40 = vsub.s32 4, %v2450_v45 }
 0x4fc   :  { %v2189_v32 = vpop.eup %2188  ;;  %1110 = vrot.lane.b32.xlu0 %v2175_v16, %s2356_s21  ;;  %2208 = vpow2.f32 %v588_v25  ;;  %v2653_v44 = vsub.s32 6, %v2450_v45 }
 0x4fd   :  { %v2191_v55 = vpop.eup %2190  ;;  %2210 = vpow2.f32 %v586_v39  ;;  %v604_v61 = vmul.f32 1.442695, %v573_v57  ;;  %v602_v62 = vmul.f32 1.442695, %v572_v58 }
 0x4fe   :  { %v2193_v59 = vpop.eup %2192  ;;  %2212 = vpow2.f32 %v596_v51 }
 0x4ff   :  { %v2195_v60 = vpop.eup %2194  ;;  %1108 = vrot.lane.b32.xlu1 %v2177_v27, %s2356_s21  ;;  %607 = vst.msk [vmem:[#allocation6 + $0x8] sm:$0xff] %vm315_vm7, %v2193_v59  ;;  %2214 = vpow2.f32 %v594_v52 }
 0x500   :  { %v2197_v63 = vpop.eup %2196  ;;  %1106 = vrot.lane.b32.xlu0 %v2179_v30, %s2356_s21  ;;  %606 = vst.msk [vmem:[#allocation6] sm:$0xff] %vm315_vm7, %v2195_v60  ;;  %2216 = vpow2.f32 %v600_v54 }
 0x501   :  { %v2199_v9 = vpop.eup %2198  ;;  %609 = vst.msk [vmem:[#allocation6 + $0x18] sm:$0xff] %vm315_vm7, %v2197_v63  ;;  %2218 = vpow2.f32 %v598_v56 }
 0x502   :  { %v2201_v23 = vpop.eup %2200  ;;  %608 = vst.msk [vmem:[#allocation6 + $0x10] sm:$0xff] %vm315_vm7, %v2199_v9  ;;  %2220 = vpow2.f32 %v604_v61 }
 0x503   :  { %v2203_v24 = vpop.eup %2202  ;;  %1116 = vrot.lane.b32.xlu1 %v2181_v35, %s2356_s21  ;;  %611 = vst.msk [vmem:[#allocation6 + $0x28] sm:$0xff] %vm315_vm7, %v2201_v23  ;;  %2222 = vpow2.f32 %v602_v62 }
 0x504   :  { %v2205_v11 = vpop.eup %2204  ;;  %1114 = vrot.lane.b32.xlu0 %v2183_v38, %s2356_s21  ;;  %610 = vst.msk [vmem:[#allocation6 + $0x20] sm:$0xff] %vm315_vm7, %v2203_v24 }
 0x505   :  { %v2207_v22 = vpop.eup %2206  ;;  %615 = vst.msk [vmem:[#allocation6 + $0x48] sm:$0xff] %vm315_vm7, %v2205_v11 }
 0x506   :  { %v2209_v13 = vpop.eup %2208  ;;  %614 = vst.msk [vmem:[#allocation6 + $0x40] sm:$0xff] %vm315_vm7, %v2207_v22 }
 0x507   :  { %v2211_v19 = vpop.eup %2210  ;;  %1120 = vrot.lane.b32.xlu1 %v2185_v42, %s2356_s21  ;;  %613 = vst.msk [vmem:[#allocation6 + $0x38] sm:$0xff] %vm315_vm7, %v2209_v13  ;;  %v2649_v42 = vsub.s32 5, %v2450_v45 }
 0x508   :  { %v2213_v33 = vpop.eup %2212  ;;  %1118 = vrot.lane.b32.xlu0 %v2187_v47, %s2356_s21  ;;  %612 = vst.msk [vmem:[#allocation6 + $0x30] sm:$0xff] %vm315_vm7, %v2211_v19 }
 0x509   :  { %v2215_v20 = vpop.eup %2214  ;;  %617 = vst.msk [vmem:[#allocation6 + $0x58] sm:$0xff] %vm315_vm7, %v2213_v33 }
 0x50a   :  { %v2217_v16 = vpop.eup %2216  ;;  %616 = vst.msk [vmem:[#allocation6 + $0x50] sm:$0xff] %vm315_vm7, %v2215_v20 }
 0x50b   :  { %v2219_v21 = vpop.eup %2218  ;;  %1124 = vrot.lane.b32.xlu1 %v2189_v32, %s2356_s21  ;;  %619 = vst.msk [vmem:[#allocation6 + $0x68] sm:$0xff] %vm315_vm7, %v2217_v16 }
 0x50c   :  { %v2221_v15 = vpop.eup %2220  ;;  %1122 = vrot.lane.b32.xlu0 %v2191_v55, %s2356_s21  ;;  %618 = vst.msk [vmem:[#allocation6 + $0x60] sm:$0xff] %vm315_vm7, %v2219_v21 }
 0x50d   :  { %v2223_v26 = vpop.eup %2222  ;;  %621 = vst.msk [vmem:[#allocation6 + $0x78] sm:$0xff] %vm315_vm7, %v2221_v15 }
 0x50e   :  { %620 = vst.msk [vmem:[#allocation6 + $0x70] sm:$0xff] %vm315_vm7, %v2223_v26 }
 0x51e   :  { %v450_v27 = vpop.permute.xlu1 %449 }
 0x51f   :  { %455 = vst.msk [vmem:[#allocation4 + $0x8] sm:$0xff] %vm453_vm12, %v450_v27  ;;  %v448_v28 = vpop.permute.xlu0 %447 }
 0x520   :  { %454 = vst.msk [vmem:[#allocation4] sm:$0xff] %vm453_vm12, %v448_v28 }
 0x522   :  { %v459_v29 = vpop.permute.xlu1 %458 }
 0x523   :  { %463 = vst.msk [vmem:[#allocation5 + $0x8] sm:$0xff] %vm453_vm12, %v459_v29  ;;  %v457_v34 = vpop.permute.xlu0 %456 }
 0x524   :  { %462 = vst.msk [vmem:[#allocation5] sm:$0xff] %vm453_vm12, %v457_v34 }
 0x526   :  { %v938_v30 = vld [vmem:[#allocation4 + $0x8] sm:$0xff] }
 0x527   :  { %v1162_v31 = vrot.slane %v938_v30, %v2490_v18  ;;  %v1173_v35 = vrot.slane %v938_v30, %v2482_v10  ;;  %v1184_v37 = vrot.slane %v938_v30, %v2457_v49  ;;  %v1195_v39 = vrot.slane %v938_v30, %v2453_v46  ;;  %v466_v57 = vld [vmem:[#allocation4] sm:$0xff] }
 0x528   :  { %v1206_v41 = vrot.slane %v938_v30, %v2645_v40  ;;  %v1217_v43 = vrot.slane %v938_v30, %v2649_v42  ;;  %v1228_v47 = vrot.slane %v938_v30, %v2653_v44  ;;  %v1239_v48 = vrot.slane %v938_v30, %v2637_v36 }
 0x529   :  { %1164 = vbcast.lane.b32.xlu1 %v1162_v31, 256  ;;  %1168 = vbcast.lane.b32.xlu0 %v1162_v31, 264  ;;  %v625_v60 = vrot.slane %v466_v57, %v2490_v18  ;;  %v636_v63 = vrot.slane %v466_v57, %v2482_v10  ;;  %v647_v24 = vrot.slane %v466_v57, %v2457_v49 }
 0x52a   :  { %v939_v25 = vld [vmem:[#allocation5 + $0x8] sm:$0xff]  ;;  %v658_v13 = vrot.slane %v466_v57, %v2453_v46  ;;  %v669_v20 = vrot.slane %v466_v57, %v2645_v40  ;;  %v680_v15 = vrot.slane %v466_v57, %v2649_v42  ;;  %v691_v28 = vrot.slane %v466_v57, %v2653_v44 }
 0x52b   :  { %v2641_v38 = vrot.slane %v939_v25, %v2637_v36  ;;  %v1436_v32 = vrot.slane %v939_v25, %v2490_v18  ;;  %v1447_v51 = vrot.slane %v939_v25, %v2482_v10  ;;  %v1458_v45 = vrot.slane %v939_v25, %v2457_v49  ;;  %v467_v31 = vld [vmem:[#allocation5] sm:$0xff] }
 0x52c   :  { %v1469_v52 = vrot.slane %v939_v25, %v2453_v46  ;;  %v1480_v54 = vrot.slane %v939_v25, %v2645_v40  ;;  %v1491_v55 = vrot.slane %v939_v25, %v2649_v42  ;;  %v1502_v56 = vrot.slane %v939_v25, %v2653_v44 }
 0x52d   :  { %1175 = vbcast.lane.b32.xlu1 %v1173_v35, 256  ;;  %1179 = vbcast.lane.b32.xlu0 %v1173_v35, 264  ;;  %v702_v30 = vrot.slane %v466_v57, %v2637_v36  ;;  %v835_v35 = vrot.slane %v467_v31, %v2490_v18  ;;  %v846_v25 = vrot.slane %v467_v31, %v2482_v10 }
 0x531   :  { %1186 = vbcast.lane.b32.xlu1 %v1184_v37, 256  ;;  %1190 = vbcast.lane.b32.xlu0 %v1184_v37, 264  ;;  %v857_v37 = vrot.slane %v467_v31, %v2457_v49  ;;  %v901_v49 = vrot.slane %v467_v31, %v2653_v44 }
 0x535   :  { %1197 = vbcast.lane.b32.xlu1 %v1195_v39, 256  ;;  %1201 = vbcast.lane.b32.xlu0 %v1195_v39, 264  ;;  %v868_v39 = vrot.slane %v467_v31, %v2453_v46 }
 0x539   :  { %1208 = vbcast.lane.b32.xlu1 %v1206_v41, 256  ;;  %1212 = vbcast.lane.b32.xlu0 %v1206_v41, 264  ;;  %v879_v41 = vrot.slane %v467_v31, %v2645_v40 }
 0x53d   :  { %1219 = vbcast.lane.b32.xlu1 %v1217_v43, 256  ;;  %1223 = vbcast.lane.b32.xlu0 %v1217_v43, 264  ;;  %v937_v43 = vld [vmem:[#allocation3 + $0x8] sm:$0xff] }
 0x53e   :  { %v1255_v10 = vrot.slane %v937_v43, %v2521_v8 }
 0x540   :  { %v1263_v46 = vcombine.high %v1255_v10, %v1255_v10 }
 0x541   :  { %1230 = vbcast.lane.b32.xlu1 %v1228_v47, 256  ;;  %1234 = vbcast.lane.b32.xlu0 %v1228_v47, 264  ;;  %v890_v47 = vrot.slane %v467_v31, %v2649_v42 }
 0x542   :  { %v1285_v42 = vrot.slane %v1263_v46, %v2521_v8 }
 0x544   :  { %v1304_v44 = vrot.slane %v1285_v42, %v2490_v18 }
 0x545   :  { %1241 = vbcast.lane.b32.xlu1 %v1239_v48, 256  ;;  %1245 = vbcast.lane.b32.xlu0 %v1239_v48, 264 }
 0x549   :  { %1442 = vbcast.lane.b32.xlu1 %v1436_v32, 264  ;;  %1438 = vbcast.lane.b32.xlu0 %v1436_v32, 256 }
 0x54d   :  { %1453 = vbcast.lane.b32.xlu1 %v1447_v51, 264  ;;  %1449 = vbcast.lane.b32.xlu0 %v1447_v51, 256  ;;  %v1271_v51 = vrot.slane %v1255_v10, %v2521_v8 }
 0x551   :  { %1464 = vbcast.lane.b32.xlu1 %v1458_v45, 264  ;;  %1460 = vbcast.lane.b32.xlu0 %v1458_v45, 256 }
 0x555   :  { %1475 = vbcast.lane.b32.xlu1 %v1469_v52, 264  ;;  %1471 = vbcast.lane.b32.xlu0 %v1469_v52, 256  ;;  %v912_v52 = vrot.slane %v467_v31, %v2637_v36 }
 0x559   :  { %1486 = vbcast.lane.b32.xlu1 %v1480_v54, 264  ;;  %1482 = vbcast.lane.b32.xlu0 %v1480_v54, 256  ;;  %v1300_v54 = vrot.slane %v1271_v51, %v2490_v18 }
 0x55d   :  { %1497 = vbcast.lane.b32.xlu1 %v1491_v55, 264  ;;  %1493 = vbcast.lane.b32.xlu0 %v1491_v55, 256 }
 0x561   :  { %v1097_v58 = vpop.permute.xlu1 %1096  ;;  %1508 = vbcast.lane.b32.xlu1 %v1502_v56, 264  ;;  %1504 = vbcast.lane.b32.xlu0 %v1502_v56, 256 }
 0x562   :  { %1144 = vst.msk [vmem:[#allocation6 + $0x8] sm:$0xff] %vm1142_vm13, %v1097_v58  ;;  %v1095_v59 = vpop.permute.xlu0 %1094 }
 0x563   :  { %1143 = vst.msk [vmem:[#allocation6] sm:$0xff] %vm1142_vm13, %v1095_v59  ;;  %v1293_v59 = vcombine.high %v1271_v51, %v1271_v51 }
 0x565   :  { %v1101_v61 = vpop.permute.xlu1 %1100  ;;  %631 = vbcast.lane.b32.xlu1 %v625_v60, 264  ;;  %627 = vbcast.lane.b32.xlu0 %v625_v60, 256  ;;  %v1248_v60 = vcombine.high %v937_v43, %v937_v43 }
 0x566   :  { %1146 = vst.msk [vmem:[#allocation6 + $0x18] sm:$0xff] %vm1142_vm13, %v1101_v61  ;;  %v1099_v62 = vpop.permute.xlu0 %1098 }
 0x567   :  { %1145 = vst.msk [vmem:[#allocation6 + $0x10] sm:$0xff] %vm1142_vm13, %v1099_v62 }
 0x569   :  { %v1105_v9 = vpop.permute.xlu1 %1104  ;;  %642 = vbcast.lane.b32.xlu1 %v636_v63, 264  ;;  %638 = vbcast.lane.b32.xlu0 %v636_v63, 256 }
 0x56a   :  { %1148 = vst.msk [vmem:[#allocation6 + $0x28] sm:$0xff] %vm1142_vm13, %v1105_v9  ;;  %v1103_v23 = vpop.permute.xlu0 %1102  ;;  %v1308_v9 = vrot.slane %v1293_v59, %v2490_v18 }
 0x56b   :  { %1147 = vst.msk [vmem:[#allocation6 + $0x20] sm:$0xff] %vm1142_vm13, %v1103_v23  ;;  %v1295_v23 = vcombine.high %v1285_v42, %v1285_v42 }
 0x56d   :  { %v1113_v11 = vpop.permute.xlu1 %1112  ;;  %653 = vbcast.lane.b32.xlu1 %v647_v24, 264  ;;  %649 = vbcast.lane.b32.xlu0 %v647_v24, 256  ;;  %v1262_v24 = vrot.slane %v1248_v60, %v2521_v8  ;;  %v465_v60 = vld [vmem:[#allocation3] sm:$0xff] }
 0x56e   :  { %1152 = vst.msk [vmem:[#allocation6 + $0x48] sm:$0xff] %vm1142_vm13, %v1113_v11  ;;  %v1111_v22 = vpop.permute.xlu0 %1110 }
 0x56f   :  { %1151 = vst.msk [vmem:[#allocation6 + $0x40] sm:$0xff] %vm1142_vm13, %v1111_v22 }
 0x571   :  { %v1109_v19 = vpop.permute.xlu1 %1108  ;;  %664 = vbcast.lane.b32.xlu1 %v658_v13, 264  ;;  %660 = vbcast.lane.b32.xlu0 %v658_v13, 256 }
 0x572   :  { %1150 = vst.msk [vmem:[#allocation6 + $0x38] sm:$0xff] %vm1142_vm13, %v1109_v19  ;;  %v1107_v33 = vpop.permute.xlu0 %1106 }
 0x573   :  { %1149 = vst.msk [vmem:[#allocation6 + $0x30] sm:$0xff] %vm1142_vm13, %v1107_v33  ;;  %v1312_v33 = vrot.slane %v1295_v23, %v2490_v18 }
 0x575   :  { %v1117_v16 = vpop.permute.xlu1 %1116  ;;  %675 = vbcast.lane.b32.xlu1 %v669_v20, 264  ;;  %671 = vbcast.lane.b32.xlu0 %v669_v20, 256  ;;  %v1278_v20 = vrot.slane %v1262_v24, %v2521_v8 }
 0x576   :  { %1154 = vst.msk [vmem:[#allocation6 + $0x58] sm:$0xff] %vm1142_vm13, %v1117_v16  ;;  %v1115_v21 = vpop.permute.xlu0 %1114  ;;  %v1264_v16 = vcombine.high %v1262_v24, %v1262_v24 }
 0x577   :  { %1153 = vst.msk [vmem:[#allocation6 + $0x50] sm:$0xff] %vm1142_vm13, %v1115_v21 }
 0x579   :  { %v1121_v26 = vpop.permute.xlu1 %1120  ;;  %686 = vbcast.lane.b32.xlu1 %v680_v15, 264  ;;  %682 = vbcast.lane.b32.xlu0 %v680_v15, 256 }
 0x57a   :  { %1156 = vst.msk [vmem:[#allocation6 + $0x68] sm:$0xff] %vm1142_vm13, %v1121_v26  ;;  %v1119_v27 = vpop.permute.xlu0 %1118 }
 0x57b   :  { %1155 = vst.msk [vmem:[#allocation6 + $0x60] sm:$0xff] %vm1142_vm13, %v1119_v27 }
 0x57d   :  { %v1125_v29 = vpop.permute.xlu1 %1124  ;;  %697 = vbcast.lane.b32.xlu1 %v691_v28, 264  ;;  %693 = vbcast.lane.b32.xlu0 %v691_v28, 256  ;;  %v1316_v28 = vrot.slane %v1278_v20, %v2490_v18 }
 0x57e   :  { %1158 = vst.msk [vmem:[#allocation6 + $0x78] sm:$0xff] %vm1142_vm13, %v1125_v29  ;;  %v1123_v34 = vpop.permute.xlu0 %1122  ;;  %v1292_v29 = vrot.slane %v1264_v16, %v2521_v8 }
 0x57f   :  { %1157 = vst.msk [vmem:[#allocation6 + $0x70] sm:$0xff] %vm1142_vm13, %v1123_v34 }
 0x581   :  { %708 = vbcast.lane.b32.xlu1 %v702_v30, 264  ;;  %704 = vbcast.lane.b32.xlu0 %v702_v30, 256 }
 0x585   :  { %841 = vbcast.lane.b32.xlu1 %v835_v35, 264  ;;  %837 = vbcast.lane.b32.xlu0 %v835_v35, 256 }
 0x589   :  { %852 = vbcast.lane.b32.xlu1 %v846_v25, 264  ;;  %848 = vbcast.lane.b32.xlu0 %v846_v25, 256  ;;  %v1320_v25 = vrot.slane %v1292_v29, %v2490_v18 }
 0x58d   :  { %863 = vbcast.lane.b32.xlu1 %v857_v37, 264  ;;  %859 = vbcast.lane.b32.xlu0 %v857_v37, 256  ;;  %v1294_v37 = vcombine.high %v1278_v20, %v1278_v20 }
 0x58f   :  { %v1324_v10 = vrot.slane %v1294_v37, %v2490_v18 }
 0x591   :  { %874 = vbcast.lane.b32.xlu1 %v868_v39, 264  ;;  %870 = vbcast.lane.b32.xlu0 %v868_v39, 256 }
 0x595   :  { %885 = vbcast.lane.b32.xlu1 %v879_v41, 264  ;;  %881 = vbcast.lane.b32.xlu0 %v879_v41, 256 }
 0x599   :  { %896 = vbcast.lane.b32.xlu1 %v890_v47, 264  ;;  %892 = vbcast.lane.b32.xlu0 %v890_v47, 256 }
 0x59b   :  { %v1165_v48 = vpop.permute.xlu1 %1164  ;;  %v1169_v32 = vpop.permute.xlu0 %1168 }
 0x59c   :  { %v1337_v55 = vmul.f32 %v1300_v54, %v1165_v48  ;;  %v1338_v56 = vmul.f32 %v1300_v54, %v1169_v32  ;;  %v1296_v48 = vcombine.high %v1292_v29, %v1292_v29 }
 0x59d   :  { %907 = vbcast.lane.b32.xlu1 %v901_v49, 264  ;;  %903 = vbcast.lane.b32.xlu0 %v901_v49, 256 }
 0x59f   :  { %v1176_v45 = vpop.permute.xlu1 %1175  ;;  %v1180_v40 = vpop.permute.xlu0 %1179 }
 0x5a0   :  { %v1339_v61 = vmul.f32 %v1304_v44, %v1176_v45  ;;  %v1340_v36 = vmul.f32 %v1304_v44, %v1180_v40  ;;  %v1328_v45 = vrot.slane %v1296_v48, %v2490_v18 }
 0x5a1   :  { %918 = vbcast.lane.b32.xlu1 %v912_v52, 264  ;;  %914 = vbcast.lane.b32.xlu0 %v912_v52, 256 }
 0x5a3   :  { %v1187_v57 = vpop.permute.xlu1 %1186  ;;  %v1191_v58 = vpop.permute.xlu0 %1190 }
 0x5a4   :  { %v1341_v11 = vmul.f32 %v1308_v9, %v1187_v57  ;;  %v1342_v22 = vmul.f32 %v1308_v9, %v1191_v58 }
 0x5a5   :  { %1369 = vrot.lane.b32.xlu0 %v1337_v55, %s2356_s21  ;;  %1371 = vrot.lane.b32.xlu1 %v1338_v56, %s2356_s21 }
 0x5a7   :  { %v1198_v62 = vpop.permute.xlu1 %1197  ;;  %v1202_v63 = vpop.permute.xlu0 %1201 }
 0x5a8   :  { %v1343_v21 = vmul.f32 %v1312_v33, %v1198_v62  ;;  %v1344_v15 = vmul.f32 %v1312_v33, %v1202_v63 }
 0x5a9   :  { %1373 = vrot.lane.b32.xlu0 %v1339_v61, %s2356_s21  ;;  %1375 = vrot.lane.b32.xlu1 %v1340_v36, %s2356_s21  ;;  %v718_v61 = vrot.slane %v465_v60, %v2521_v8 }
 0x5ab   :  { %v1209_v13 = vpop.permute.xlu1 %1208  ;;  %v1213_v19 = vpop.permute.xlu0 %1212  ;;  %v734_v63 = vrot.slane %v718_v61, %v2521_v8  ;;  %v726_v9 = vcombine.high %v718_v61, %v718_v61 }
 0x5ac   :  { %v1345_v34 = vmul.f32 %v1316_v28, %v1209_v13  ;;  %v1346_v30 = vmul.f32 %v1316_v28, %v1213_v19 }
 0x5ad   :  { %1377 = vrot.lane.b32.xlu0 %v1341_v11, %s2356_s21  ;;  %1379 = vrot.lane.b32.xlu1 %v1342_v22, %s2356_s21  ;;  %v763_v24 = vrot.slane %v734_v63, %v2490_v18  ;;  %v748_v11 = vrot.slane %v726_v9, %v2521_v8  ;;  %v756_v16 = vcombine.high %v734_v63, %v734_v63 }
 0x5af   :  { %v1220_v26 = vpop.permute.xlu1 %1219  ;;  %v1224_v27 = vpop.permute.xlu0 %1223  ;;  %v767_v20 = vrot.slane %v748_v11, %v2490_v18  ;;  %v771_v29 = vrot.slane %v756_v16, %v2490_v18 }
 0x5b0   :  { %v1347_v39 = vmul.f32 %v1320_v25, %v1220_v26  ;;  %v1348_v41 = vmul.f32 %v1320_v25, %v1224_v27 }
 0x5b1   :  { %1381 = vrot.lane.b32.xlu0 %v1343_v21, %s2356_s21  ;;  %1383 = vrot.lane.b32.xlu1 %v1344_v15, %s2356_s21  ;;  %v711_v21 = vcombine.high %v465_v60, %v465_v60 }
 0x5b3   :  { %v1231_v31 = vpop.permute.xlu1 %1230  ;;  %v1235_v35 = vpop.permute.xlu0 %1234 }
 0x5b4   :  { %v1349_v32 = vmul.f32 %v1324_v10, %v1231_v31  ;;  %v1350_v49 = vmul.f32 %v1324_v10, %v1235_v35 }
 0x5b5   :  { %1385 = vrot.lane.b32.xlu0 %v1345_v34, %s2356_s21  ;;  %1387 = vrot.lane.b32.xlu1 %v1346_v30, %s2356_s21  ;;  %v758_v34 = vcombine.high %v748_v11, %v748_v11  ;;  %v725_v30 = vrot.slane %v711_v21, %v2521_v8 }
 0x5b7   :  { %v1242_v43 = vpop.permute.xlu1 %1241  ;;  %v1246_v47 = vpop.permute.xlu0 %1245 }
 0x5b8   :  { %v1351_v40 = vmul.f32 %v1328_v45, %v1242_v43  ;;  %v1352_v52 = vmul.f32 %v1328_v45, %v1246_v47  ;;  %v727_v43 = vcombine.high %v725_v30, %v725_v30 }
 0x5b9   :  { %1389 = vrot.lane.b32.xlu0 %v1347_v39, %s2356_s21  ;;  %1391 = vrot.lane.b32.xlu1 %v1348_v41, %s2356_s21  ;;  %v775_v39 = vrot.slane %v758_v34, %v2490_v18  ;;  %v741_v41 = vrot.slane %v725_v30, %v2521_v8 }
 0x5ba   :  { %v755_v45 = vrot.slane %v727_v43, %v2521_v8 }
 0x5bb   :  { %v2721_v51 = vpop.permute.xlu1 %1442  ;;  %v2723_v46 = vpop.permute.xlu0 %1438  ;;  %v757_v9 = vcombine.high %v741_v41, %v741_v41 }
 0x5bc   :  { %v783_v63 = vrot.slane %v755_v45, %v2490_v18 }
 0x5bd   :  { %1393 = vrot.lane.b32.xlu0 %v1349_v32, %s2356_s21  ;;  %1395 = vrot.lane.b32.xlu1 %v1350_v49, %s2356_s21  ;;  %v779_v49 = vrot.slane %v741_v41, %v2490_v18 }
 0x5bf   :  { %v2728_v54 = vpop.permute.xlu1 %1453  ;;  %v2730_v42 = vpop.permute.xlu0 %1449 }
 0x5c1   :  { %1397 = vrot.lane.b32.xlu0 %v1351_v40, %s2356_s21  ;;  %1399 = vrot.lane.b32.xlu1 %v1352_v52, %s2356_s21 }
 0x5c3   :  { %v2734_v55 = vpop.permute.xlu1 %1464  ;;  %v2736_v56 = vpop.permute.xlu0 %1460 }
 0x5c5   :  { %1515 = vbcast.lane.b32.xlu0 %v2641_v38, 256  ;;  %1519 = vbcast.lane.b32.xlu1 %v2641_v38, 264 }
 0x5c7   :  { %v2740_v57 = vpop.permute.xlu1 %1475  ;;  %v2742_v58 = vpop.permute.xlu0 %1471 }
 0x5cb   :  { %v2744_v44 = vpop.permute.xlu1 %1486  ;;  %v2746_v59 = vpop.permute.xlu0 %1482 }
 0x5cf   :  { %v2749_v36 = vpop.permute.xlu1 %1497  ;;  %v2751_v62 = vpop.permute.xlu0 %1493 }
 0x5d3   :  { %v2754_v23 = vpop.permute.xlu1 %1508  ;;  %v2756_v38 = vpop.permute.xlu0 %1504 }
 0x5d7   :  { %v632_v22 = vpop.permute.xlu1 %631  ;;  %v628_v13 = vpop.permute.xlu0 %627 }
 0x5d8   :  { %v801_v19 = vmul.f32 %v763_v24, %v632_v22  ;;  %v800_v33 = vmul.f32 %v763_v24, %v628_v13 }
 0x5da   :  { %817 = vst.msk [vmem:[#allocation7 + $0x8] sm:$0xff] %vm315_vm7, %v801_v19  ;;  %816 = vst.msk [vmem:[#allocation7] sm:$0xff] %vm315_vm7, %v800_v33  ;;  %v787_v19 = vrot.slane %v757_v9, %v2490_v18  ;;  %v759_v33 = vcombine.high %v755_v45, %v755_v45  ;;  %v2848_v9 = vmov 0.0  }
 0x5db   :  { %v643_v15 = vpop.permute.xlu1 %642  ;;  %v639_v26 = vpop.permute.xlu0 %638 }
 0x5dc   :  { %v803_v27 = vmul.f32 %v767_v20, %v643_v15  ;;  %v802_v28 = vmul.f32 %v767_v20, %v639_v26  ;;  %v791_v26 = vrot.slane %v759_v33, %v2490_v18 }
 0x5de   :  { %819 = vst.msk [vmem:[#allocation7 + $0x18] sm:$0xff] %vm315_vm7, %v803_v27  ;;  %818 = vst.msk [vmem:[#allocation7 + $0x10] sm:$0xff] %vm315_vm7, %v802_v28 }
 0x5df   :  { %v654_v31 = vpop.permute.xlu1 %653  ;;  %v650_v35 = vpop.permute.xlu0 %649 }
 0x5e0   :  { %v805_v25 = vmul.f32 %v771_v29, %v654_v31  ;;  %v804_v37 = vmul.f32 %v771_v29, %v650_v35 }
 0x5e2   :  { %821 = vst.msk [vmem:[#allocation7 + $0x28] sm:$0xff] %vm315_vm7, %v805_v25  ;;  %820 = vst.msk [vmem:[#allocation7 + $0x20] sm:$0xff] %vm315_vm7, %v804_v37 }
 0x5e3   :  { %v665_v47 = vpop.permute.xlu1 %664  ;;  %v661_v10 = vpop.permute.xlu0 %660 }
 0x5e4   :  { %v807_v48 = vmul.f32 %v775_v39, %v665_v47  ;;  %v806_v32 = vmul.f32 %v775_v39, %v661_v10 }
 0x5e6   :  { %823 = vst.msk [vmem:[#allocation7 + $0x38] sm:$0xff] %vm315_vm7, %v807_v48  ;;  %822 = vst.msk [vmem:[#allocation7 + $0x30] sm:$0xff] %vm315_vm7, %v806_v32 }
 0x5e7   :  { %v676_v40 = vpop.permute.xlu1 %675  ;;  %v672_v52 = vpop.permute.xlu0 %671 }
 0x5e8   :  { %v809_v60 = vmul.f32 %v779_v49, %v676_v40  ;;  %v808_v61 = vmul.f32 %v779_v49, %v672_v52 }
 0x5ea   :  { %825 = vst.msk [vmem:[#allocation7 + $0x48] sm:$0xff] %vm315_vm7, %v809_v60  ;;  %824 = vst.msk [vmem:[#allocation7 + $0x40] sm:$0xff] %vm315_vm7, %v808_v61 }
 0x5eb   :  { %v687_v24 = vpop.permute.xlu1 %686  ;;  %v683_v11 = vpop.permute.xlu0 %682 }
 0x5ec   :  { %v811_v22 = vmul.f32 %v783_v63, %v687_v24  ;;  %v810_v13 = vmul.f32 %v783_v63, %v683_v11  ;;  %v2850_v24 = vmov 0.0  }
 0x5ee   :  { %827 = vst.msk [vmem:[#allocation7 + $0x58] sm:$0xff] %vm315_vm7, %v811_v22  ;;  %826 = vst.msk [vmem:[#allocation7 + $0x50] sm:$0xff] %vm315_vm7, %v810_v13 }
 0x5ef   :  { %v698_v20 = vpop.permute.xlu1 %697  ;;  %v694_v16 = vpop.permute.xlu0 %693 }
 0x5f0   :  { %v813_v21 = vmul.f32 %v787_v19, %v698_v20  ;;  %v812_v15 = vmul.f32 %v787_v19, %v694_v16 }
 0x5f2   :  { %829 = vst.msk [vmem:[#allocation7 + $0x68] sm:$0xff] %vm315_vm7, %v813_v21  ;;  %828 = vst.msk [vmem:[#allocation7 + $0x60] sm:$0xff] %vm315_vm7, %v812_v15 }
 0x5f3   :  { %v709_v27 = vpop.permute.xlu1 %708  ;;  %v705_v28 = vpop.permute.xlu0 %704 }
 0x5f4   :  { %v815_v29 = vmul.f32 %v791_v26, %v709_v27  ;;  %v814_v34 = vmul.f32 %v791_v26, %v705_v28 }
 0x5f6   :  { %831 = vst.msk [vmem:[#allocation7 + $0x78] sm:$0xff] %vm315_vm7, %v815_v29  ;;  %830 = vst.msk [vmem:[#allocation7 + $0x70] sm:$0xff] %vm315_vm7, %v814_v34 }
 0x5f7   :  { %v842_v30 = vpop.permute.xlu1 %841  ;;  %v838_v31 = vpop.permute.xlu0 %837 }
 0x5f8   :  { %921 = vst.msk [vmem:[#allocation8 + $0x8] sm:$0xff] %vm315_vm7, %v842_v30  ;;  %920 = vst.msk [vmem:[#allocation8] sm:$0xff] %vm315_vm7, %v838_v31 }
 0x5f9   :  { %1522 = vst.msk [vmem:[#allocation8 + $0x8] sm:$0xff] %vm1142_vm13, %v2721_v51  ;;  %1521 = vst.msk [vmem:[#allocation8] sm:$0xff] %vm1142_vm13, %v2723_v46 }
 0x5fb   :  { %v853_v18 = vpop.permute.xlu1 %852  ;;  %v849_v35 = vpop.permute.xlu0 %848 }
 0x5fc   :  { %923 = vst.msk [vmem:[#allocation8 + $0x18] sm:$0xff] %vm315_vm7, %v853_v18  ;;  %922 = vst.msk [vmem:[#allocation8 + $0x10] sm:$0xff] %vm315_vm7, %v849_v35 }
 0x5fd   :  { %1524 = vst.msk [vmem:[#allocation8 + $0x18] sm:$0xff] %vm1142_vm13, %v2728_v54  ;;  %1523 = vst.msk [vmem:[#allocation8 + $0x10] sm:$0xff] %vm1142_vm13, %v2730_v42 }
 0x5ff   :  { %v864_v25 = vpop.permute.xlu1 %863  ;;  %v860_v37 = vpop.permute.xlu0 %859 }
 0x600   :  { %925 = vst.msk [vmem:[#allocation8 + $0x28] sm:$0xff] %vm315_vm7, %v864_v25  ;;  %924 = vst.msk [vmem:[#allocation8 + $0x20] sm:$0xff] %vm315_vm7, %v860_v37 }
 0x601   :  { %1526 = vst.msk [vmem:[#allocation8 + $0x28] sm:$0xff] %vm1142_vm13, %v2734_v55  ;;  %1525 = vst.msk [vmem:[#allocation8 + $0x20] sm:$0xff] %vm1142_vm13, %v2736_v56 }
 0x603   :  { %v875_v51 = vpop.permute.xlu1 %874  ;;  %v871_v46 = vpop.permute.xlu0 %870 }
 0x604   :  { %927 = vst.msk [vmem:[#allocation8 + $0x38] sm:$0xff] %vm315_vm7, %v875_v51  ;;  %926 = vst.msk [vmem:[#allocation8 + $0x30] sm:$0xff] %vm315_vm7, %v871_v46 }
 0x605   :  { %1528 = vst.msk [vmem:[#allocation8 + $0x38] sm:$0xff] %vm1142_vm13, %v2740_v57  ;;  %1527 = vst.msk [vmem:[#allocation8 + $0x30] sm:$0xff] %vm1142_vm13, %v2742_v58 }
 0x607   :  { %v886_v54 = vpop.permute.xlu1 %885  ;;  %v882_v42 = vpop.permute.xlu0 %881 }
 0x608   :  { %929 = vst.msk [vmem:[#allocation8 + $0x48] sm:$0xff] %vm315_vm7, %v886_v54  ;;  %928 = vst.msk [vmem:[#allocation8 + $0x40] sm:$0xff] %vm315_vm7, %v882_v42 }
 0x609   :  { %1530 = vst.msk [vmem:[#allocation8 + $0x48] sm:$0xff] %vm1142_vm13, %v2744_v44  ;;  %1529 = vst.msk [vmem:[#allocation8 + $0x40] sm:$0xff] %vm1142_vm13, %v2746_v59 }
 0x60b   :  { %v897_v55 = vpop.permute.xlu1 %896  ;;  %v893_v56 = vpop.permute.xlu0 %892 }
 0x60c   :  { %931 = vst.msk [vmem:[#allocation8 + $0x58] sm:$0xff] %vm315_vm7, %v897_v55  ;;  %930 = vst.msk [vmem:[#allocation8 + $0x50] sm:$0xff] %vm315_vm7, %v893_v56 }
 0x60d   :  { %1532 = vst.msk [vmem:[#allocation8 + $0x58] sm:$0xff] %vm1142_vm13, %v2749_v36  ;;  %1531 = vst.msk [vmem:[#allocation8 + $0x50] sm:$0xff] %vm1142_vm13, %v2751_v62 }
 0x60f   :  { %v908_v57 = vpop.permute.xlu1 %907  ;;  %v904_v58 = vpop.permute.xlu0 %903 }
 0x610   :  { %933 = vst.msk [vmem:[#allocation8 + $0x68] sm:$0xff] %vm315_vm7, %v908_v57  ;;  %932 = vst.msk [vmem:[#allocation8 + $0x60] sm:$0xff] %vm315_vm7, %v904_v58 }
 0x611   :  { %1534 = vst.msk [vmem:[#allocation8 + $0x68] sm:$0xff] %vm1142_vm13, %v2754_v23  ;;  %1533 = vst.msk [vmem:[#allocation8 + $0x60] sm:$0xff] %vm1142_vm13, %v2756_v38 }
 0x613   :  { %v919_v44 = vpop.permute.xlu1 %918  ;;  %v915_v59 = vpop.permute.xlu0 %914 }
 0x614   :  { %935 = vst.msk [vmem:[#allocation8 + $0x78] sm:$0xff] %vm315_vm7, %v919_v44  ;;  %934 = vst.msk [vmem:[#allocation8 + $0x70] sm:$0xff] %vm315_vm7, %v915_v59 }
 0x617   :  { %v1372_v36 = vpop.permute.xlu1 %1371  ;;  %v1370_v62 = vpop.permute.xlu0 %1369 }
 0x618   :  { %1418 = vst.msk [vmem:[#allocation7 + $0x8] sm:$0xff] %vm1142_vm13, %v1372_v36  ;;  %1417 = vst.msk [vmem:[#allocation7] sm:$0xff] %vm1142_vm13, %v1370_v62 }
 0x61b   :  { %v1376_v39 = vpop.permute.xlu1 %1375  ;;  %v1374_v41 = vpop.permute.xlu0 %1373 }
 0x61c   :  { %1420 = vst.msk [vmem:[#allocation7 + $0x18] sm:$0xff] %vm1142_vm13, %v1376_v39  ;;  %1419 = vst.msk [vmem:[#allocation7 + $0x10] sm:$0xff] %vm1142_vm13, %v1374_v41 }
 0x61f   :  { %v1380_v23 = vpop.permute.xlu1 %1379  ;;  %v1378_v38 = vpop.permute.xlu0 %1377 }
 0x620   :  { %1422 = vst.msk [vmem:[#allocation7 + $0x28] sm:$0xff] %vm1142_vm13, %v1380_v23  ;;  %1421 = vst.msk [vmem:[#allocation7 + $0x20] sm:$0xff] %vm1142_vm13, %v1378_v38 }
 0x623   :  { %v1384_v43 = vpop.permute.xlu1 %1383  ;;  %v1382_v47 = vpop.permute.xlu0 %1381 }
 0x624   :  { %1424 = vst.msk [vmem:[#allocation7 + $0x38] sm:$0xff] %vm1142_vm13, %v1384_v43  ;;  %1423 = vst.msk [vmem:[#allocation7 + $0x30] sm:$0xff] %vm1142_vm13, %v1382_v47 }
 0x627   :  { %v1388_v10 = vpop.permute.xlu1 %1387  ;;  %v1386_v48 = vpop.permute.xlu0 %1385 }
 0x628   :  { %1426 = vst.msk [vmem:[#allocation7 + $0x48] sm:$0xff] %vm1142_vm13, %v1388_v10  ;;  %1425 = vst.msk [vmem:[#allocation7 + $0x40] sm:$0xff] %vm1142_vm13, %v1386_v48 }
 0x62b   :  { %v1392_v32 = vpop.permute.xlu1 %1391  ;;  %v1390_v49 = vpop.permute.xlu0 %1389 }
 0x62c   :  { %1428 = vst.msk [vmem:[#allocation7 + $0x58] sm:$0xff] %vm1142_vm13, %v1392_v32  ;;  %1427 = vst.msk [vmem:[#allocation7 + $0x50] sm:$0xff] %vm1142_vm13, %v1390_v49 }
 0x62f   :  { %v1396_v45 = vpop.permute.xlu1 %1395  ;;  %v1394_v40 = vpop.permute.xlu0 %1393 }
 0x630   :  { %1430 = vst.msk [vmem:[#allocation7 + $0x68] sm:$0xff] %vm1142_vm13, %v1396_v45  ;;  %1429 = vst.msk [vmem:[#allocation7 + $0x60] sm:$0xff] %vm1142_vm13, %v1394_v40 }
 0x633   :  { %v1400_v52 = vpop.permute.xlu1 %1399  ;;  %v1398_v60 = vpop.permute.xlu0 %1397 }
 0x634   :  { %1432 = vst.msk [vmem:[#allocation7 + $0x78] sm:$0xff] %vm1142_vm13, %v1400_v52  ;;  %1431 = vst.msk [vmem:[#allocation7 + $0x70] sm:$0xff] %vm1142_vm13, %v1398_v60 }
 0x637   :  { %v1520_v61 = vpop.permute.xlu1 %1519  ;;  %v1516_v63 = vpop.permute.xlu0 %1515 }
 0x638   :  { %1536 = vst.msk [vmem:[#allocation8 + $0x78] sm:$0xff] %vm1142_vm13, %v1520_v61  ;;  %1535 = vst.msk [vmem:[#allocation8 + $0x70] sm:$0xff] %vm1142_vm13, %v1516_v63 }
 0x639 LB: > { %s1978_s24 = sshll.u32 %s2348_s23, 6  ;;  %s1930_s28 = sshll.u32 %s2348_s23, 2  ;;  %s2348_s23 = sphi %s2852_s23, %s1542_s23   ;;  %v2344_v24 = vphi %v2850_v24, %v2945_v24   ;;  %v2340_v9 = vphi %v2848_v9, %v2944_v9  }
 0x63a   : > { %s2860_s25 = scalar_lea.vmem [#allocation6], %s1978_s24  ;;  %s2864_s26 = scalar_lea.vmem [#allocation7], %s1978_s24 }
 0x63b   : > { %v1548_v11 = vld [vmem:[%s2860_s25] sm:$0xff]  ;;  %v1549_v22 = vld [vmem:[%s2860_s25 + $0x8] sm:$0xff]  ;;  %s2868_s27 = scalar_lea.vmem [#allocation8], %s1978_s24  ;;  %v1934_v15 = vld [vmem:[%s2860_s25 + $0x10] sm:$0xff]  ;;  %s1569_s29 = scalar_lea.vmem [#allocation9], %s1930_s28 }
 0x63c   : > { %v1553_v13 = vld [vmem:[%s2864_s26] sm:$0xff]  ;;  %v1550_v19 = vmul.f32 %v2344_v24, %v1548_v11  ;;  %v1551_v33 = vmul.f32 %v2340_v9, %v1549_v22  ;;  %v1554_v20 = vld [vmem:[%s2864_s26 + $0x8] sm:$0xff]  ;;  %v1935_v26 = vld [vmem:[%s2860_s25 + $0x18] sm:$0xff]  ;;  %s1542_s23 = sadd.s32 1, %s2348_s23  }
 0x63d   : > { %v1938_v29 = vld [vmem:[%s2864_s26 + $0x10] sm:$0xff]  ;;  %v1939_v34 = vld [vmem:[%s2864_s26 + $0x18] sm:$0xff]  ;;  %v1948_v51 = vld [vmem:[%s2860_s25 + $0x20] sm:$0xff]  ;;  %p1539_p10 = scmp.ge.s32.totalorder %s1542_s23, 2  }
 0x63e   : > { %v1555_v27 = vadd.f32 %v1553_v13, %v1550_v19  ;;  %v1556_v28 = vadd.f32 %v1554_v20, %v1551_v33  ;;  %v1949_v55 = vld [vmem:[%s2860_s25 + $0x28] sm:$0xff]  ;;  %v1952_v56 = vld [vmem:[%s2864_s26 + $0x20] sm:$0xff]  ;;  %v1962_v41 = vld [vmem:[%s2860_s25 + $0x30] sm:$0xff]  ;;  %s2359_s30 = smov (%p1539_p10), 32   ;;  %s2360_s4 = smov (%p1539_p10), [#allocation16]   ;;  %vm1840_vm14 = vcmask (%p1539_p10), 523520  }
 0x63f   : > { %v1558_v16 = vld [vmem:[%s2868_s27] sm:$0xff]  ;;  %v1559_v21 = vld [vmem:[%s2868_s27 + $0x8] sm:$0xff]  ;;  %v1942_v25 = vld [vmem:[%s2868_s27 + $0x10] sm:$0xff]  ;;  %s1848_s5 = sshll.u32 (%p1539_p10), %s2360_s4, 4  ;;  %s1849_s5 = int_to_ptr.vmem [resolvable:$true] %s1848_s5 }
 0x640   : > { %v1560_v30 = vmul.f32 %v1558_v16, %v1555_v27  ;;  %v1561_v31 = vmul.f32 %v1559_v21, %v1556_v28  ;;  %v1576_v18 = vmul.f32 %v1934_v15, %v1555_v27  ;;  %v1577_v35 = vmul.f32 %v1935_v26, %v1556_v28  ;;  %v1943_v37 = vld [vmem:[%s2868_s27 + $0x18] sm:$0xff]  ;;  %v1953_v36 = vld [vmem:[%s2864_s26 + $0x28] sm:$0xff]  ;;  %v1956_v39 = vld [vmem:[%s2868_s27 + $0x20] sm:$0xff]  ;;  %s2298_s6 = scalar_lea.vmem (%p1539_p10), %s1849_s5, 128  ;;  %p2303_p12 = scmp.lt.s32.totalorder (%p1539_p10), %s1849_s5, %s1849_s5 }
 0x641   : > { %v1957_v47 = vld [vmem:[%s2868_s27 + $0x28] sm:$0xff]  ;;  %v1963_v10 = vld [vmem:[%s2860_s25 + $0x38] sm:$0xff]  ;;  %v1966_v32 = vld [vmem:[%s2864_s26 + $0x30] sm:$0xff]  ;;  %p2299_p11 = scmp.ne.s32.totalorder (%p1539_p10), %s1849_s5, %s2298_s6  ;;  %p2304_p13 = scmp.lt.s32.totalorder (%p1539_p10), %s2298_s6, %s2298_s6 }
 0x642   : > { %v1562_v46 = vadd.f32 %v1561_v31, %v1560_v30  ;;  %v1581_v54 = vadd.f32 %v1938_v29, %v1576_v18  ;;  %v1582_v42 = vadd.f32 %v1939_v34, %v1577_v35  ;;  %v1967_v60 = vld [vmem:[%s2864_s26 + $0x38] sm:$0xff]  ;;  %v1970_v9 = vld [vmem:[%s2868_s27 + $0x30] sm:$0xff] }
 0x643   : > { %v1971_v13 = vld [vmem:[%s2868_s27 + $0x38] sm:$0xff]  ;;  %p2305_p0 = por (%p1539_p10), %p2304_p13, %p2303_p12 }
 0x644   : > { %v1563_v57 = vrot.slane %v1562_v46, 4  ;;  %v1586_v58 = vmul.f32 %v1942_v25, %v1581_v54  ;;  %v1587_v44 = vmul.f32 %v1943_v37, %v1582_v42  ;;  %v1602_v59 = vmul.f32 %v1948_v51, %v1581_v54 }
 0x645   : > { %v1603_v62 = vmul.f32 %v1949_v55, %v1582_v42  ;;  %p2306_p1 = pnand (%p1539_p10), %p2305_p0, %p2299_p11 }
 0x646   : > { %v1564_v23 = vadd.f32 %v1563_v57, %v1562_v46  ;;  %v1588_v38 = vadd.f32 %v1587_v44, %v1586_v58  ;;  %v1607_v43 = vadd.f32 %v1952_v56, %v1602_v59  ;;  %v1718_v57 = vmul.f32 (%p1539_p10), %v2510_v17, %v2500_v12 }
 0x647   : > { %v1608_v48 = vadd.f32 %v1953_v36, %v1603_v62  ;;  %v1719_v58 = vmul.f32 (%p1539_p10), %v2510_v17, %v2504_v14  ;;  %v2087_v62 = vpack.c.bf16 (%p1539_p10), %v2425_v1, %v2423_v0  ;;  %v1975_v1 = vmul.f32 (%p1539_p10), -1.442695, %v2459_v50 }
 0x648   : > { %v1565_v49 = vrot.slane %v1564_v23, 2  ;;  %v1589_v45 = vrot.slane %v1588_v38, 4  ;;  %v1612_v40 = vmul.f32 %v1956_v39, %v1607_v43  ;;  %v1628_v52 = vmul.f32 %v1962_v41, %v1607_v43  ;;  %1722 = vrot.lane.b32.xlu0 (%p1539_p10), %v1718_v57, %s2356_s21 }
 0x649   : > { %v1613_v61 = vmul.f32 %v1957_v47, %v1608_v48  ;;  %v1629_v63 = vmul.f32 %v1963_v10, %v1608_v48  ;;  %v2091_v43 = vpack.c.bf16 (%p1539_p10), %v2429_v3, %v2427_v2  ;;  %1724 = vrot.lane.b32.xlu1 (%p1539_p10), %v1719_v58, %s2356_s21  ;;  %v1974_v10 = vmul.f32 (%p1539_p10), -1.442695, %v2464_v53  ;;  %2088 = vmatprep.subr.bf16.mxu0 (%p1539_p10), %v2087_v62 }
 0x64a   : > { %v1566_v24 = vadd.f32 %v1565_v49, %v1564_v23  ;;  %v1590_v11 = vadd.f32 %v1589_v45, %v1588_v38  ;;  %v1633_v22 = vadd.f32 %v1966_v32, %v1628_v52   ;;  %2090 = vmatpush3.bf16.msra.mxu0 (%p1539_p10), %v2087_v62  ;;  %v2095_v49 = vpack.c.bf16 (%p1539_p10), %v2433_v5, %v2431_v4 }
 0x64b   : > { %v1614_v19 = vadd.f32 %v1613_v61, %v1612_v40  ;;  %v1634_v33 = vadd.f32 %v1967_v60, %v1629_v63   ;;  %2224 = vpow2.f32 (%p1539_p10), %v1974_v10  ;;  %2092 = vmatprep.subr.bf16.mxu0 (%p1539_p10), %v2091_v43  ;;  %v2099_v61 = vpack.c.bf16 (%p1539_p10), %v2437_v7, %v2435_v6 }
 0x64c   : > { %v1567_v20 = vrot.slane %v1566_v24, 1  ;;  %v1591_v16 = vrot.slane %v1590_v11, 2  ;;  %v1638_v21 = vmul.f32 %v1970_v9, %v1633_v22  ;;  %2226 = vpow2.f32 (%p1539_p10), %v1975_v1 }
 0x64d   : > { %v1615_v15 = vrot.slane %v1614_v19, 4  ;;  %v1639_v26 = vmul.f32 %v1971_v13, %v1634_v33  ;;  %v2944_v9 = vmov %v1634_v33 }
 0x64e   : > { %v1568_v27 = vadd.f32 %v1567_v20, %v1566_v24  ;;  %v1592_v28 = vadd.f32 %v1591_v16, %v1590_v11  ;;  %v2945_v24 = vmov %v1633_v22  ;;  %2094 = vmatpush3.bf16.msra.mxu0 (%p1539_p10), %v2091_v43 }
 0x64f   : > { %v1616_v29 = vadd.f32 %v1615_v15, %v1614_v19  ;;  %v1640_v34 = vadd.f32 %v1639_v26, %v1638_v21  ;;  %2096 = vmatprep.subr.bf16.mxu0 (%p1539_p10), %v2095_v49 }
 0x650   : > { %1570 = vst [vmem:[%s1569_s29] sm:$0x1] %v1568_v27  ;;  %v1593_v30 = vrot.slane %v1592_v28, 1 }
 0x651   : > { %v1617_v31 = vrot.slane %v1616_v29, 2  ;;  %v1641_v18 = vrot.slane %v1640_v34, 4 }
 0x652   : > { %v1594_v35 = vadd.f32 %v1593_v30, %v1592_v28  ;;  %2098 = vmatpush3.bf16.msra.mxu0 (%p1539_p10), %v2095_v49 }
 0x653   : > { %v1618_v25 = vadd.f32 %v1617_v31, %v1616_v29  ;;  %v1642_v37 = vadd.f32 %v1641_v18, %v1640_v34  ;;  %2100 = vmatprep.subr.bf16.mxu0 (%p1539_p10), %v2099_v61 }
 0x654   : > { %1945 = vst [vmem:[%s1569_s29 + $0x1] sm:$0x1] %v1594_v35 }
 0x655   : > { %v1619_v51 = vrot.slane %v1618_v25, 1  ;;  %v1643_v46 = vrot.slane %v1642_v37, 2  ;;  %v2225_v9 = vpop.eup (%p1539_p10), %2224 }
 0x656   :  { %v2227_v24 = vpop.eup (%p1539_p10), %2226  ;;  %v1736_v11 = vadd.f32 (%p1539_p10), 1.0, %v2225_v9  ;;  %2102 = vmatpush3.bf16.msra.mxu0 (%p1539_p10), %v2099_v61 }
 0x657   : > { %v1620_v54 = vadd.f32 %v1619_v51, %v1618_v25  ;;  %v1644_v42 = vadd.f32 %v1643_v46, %v1642_v37  ;;  %1541 = sbr.rel (!%p1539_p10) target bundleno = 1593 (0x639), region = 67  ;;  %v1737_v4 = vadd.f32 (%p1539_p10), 1.0, %v2227_v24 }
 0x658   :  { %2228 = vrcp.f32 (%p1539_p10), %v1736_v11 }
 0x659   : > { %1959 = vst [vmem:[%s1569_s29 + $0x2] sm:$0x1] %v1620_v54  ;;  %v1645_v55 = vrot.slane %v1644_v42, 1  ;;  %2230 = vrcp.f32 (%p1539_p10), %v1737_v4 }
 0x65b   : > { %v1646_v56 = vadd.f32 %v1645_v55, %v1644_v42 }
 0x65d   : > { %1973 = vst [vmem:[%s1569_s29 + $0x3] sm:$0x1] %v1646_v56 }
 0x662   :  { %v2229_v5 = vpop.eup %2228 }
 0x663   :  { %v2231_v22 = vpop.eup %2230 }
 0x664   :  { %v1649_v44 = vld [vmem:[#allocation9] sm:$0x1]  ;;  %v1650_v59 = vld [vmem:[#allocation9 + $0x1] sm:$0x1]  ;;  %v1651_v36 = vld [vmem:[#allocation9 + $0x2] sm:$0x1]  ;;  %v1743_v13 = vmul.f32 %v2231_v22, %v2459_v50 }
 0x665   :  { %v1652_v39 = vld [vmem:[#allocation9 + $0x3] sm:$0x1]  ;;  %v1653_v41 = vld [vmem:[#allocation9 + $0x4] sm:$0x1]  ;;  %v1654_v23 = vld [vmem:[#allocation9 + $0x5] sm:$0x1]  ;;  %v1665_v38 = vcombine.low %v1649_v44, %v1650_v59 }
 0x666   :  { %v1655_v12 = vld [vmem:[#allocation9 + $0x6] sm:$0x1]  ;;  %v1656_v47 = vld [vmem:[#allocation9 + $0x7] sm:$0x1]  ;;  %v1666_v14 = vcombine.low %v1651_v36, %v1652_v39  ;;  %v1667_v17 = vcombine.low %v1653_v41, %v1654_v23 }
 0x667   :  { %v1668_v48 = vcombine.low %v1655_v12, %v1656_v47  ;;  %v1675_v0 = vrot.slane %v1665_v38, %v2521_v8 }
 0x668   :  { %v1682_v32 = vrot.slane %v1666_v14, %v2521_v8  ;;  %v1689_v2 = vrot.slane %v1667_v17, %v2521_v8 }
 0x669   :  { %v1696_v3 = vrot.slane %v1668_v48, %v2521_v8 }
 0x66a   :  { %v1697_v45 = vcombine.low %v1675_v0, %v1682_v32 }
 0x66b   :  { %v1698_v40 = vcombine.low %v1689_v2, %v1696_v3 }
 0x66c   :  { %v1705_v52 = vrot.slane %v1697_v45, %v2521_v8 }
 0x66d   :  { %v1712_v60 = vrot.slane %v1698_v40, %v2521_v8  ;;  %v1742_v8 = vmul.f32 %v2229_v5, %v2464_v53 }
 0x66f   :  { %v1713_v63 = vcombine.low %v1705_v52, %v1712_v60  ;;  %1746 = vrot.lane.b32.xlu1 %v1742_v8, %s2356_s21 }
 0x671   :  { %1715 = vrot.lane.b32.xlu0 %v1713_v63, %s2356_s21 }
 0x675   :  { %1748 = vrot.lane.b32.xlu0 %v1743_v13, %s2356_s21 }
 0x6ba   :  { %v1723_v6 = vpop.permute.xlu0 %1722 }
 0x6bb   :  { %v1725_v7 = vpop.permute.xlu1 %1724  ;;  %v1728_v33 = vadd.f32 %v1723_v6, %v1713_v63 }
 0x6e1   :  { %v1747_v16 = vpop.permute.xlu1 %1746 }
 0x6e2   :  { %v1752_v15 = vmul.f32 %v1747_v16, %v1728_v33 }
 0x6e3   :  { %v1716_v19 = vpop.permute.xlu0 %1715 }
 0x6e4   :  { %v1729_v20 = vadd.f32 %v1725_v7, %v1716_v19  ;;  %2060 = vmatprep.mubr.msk.f32.mxu0 %vm315_vm7, %v1752_v15 }
 0x6e7   :  { %v1749_v21 = vpop.permute.xlu0 %1748 }
 0x6e8   :  { %v1753_v26 = vmul.f32 %v1749_v21, %v1729_v20 }
 0x6ea   :  { %2061 = vmatmul.mubr.msk.f32.vlgmr.msra.gmra.mrb[2].mxu0 %vm315_vm7, %v1753_v26 }
 0x7bd   :  { %v2062_v53 = vpop.f32.mrb[2].mxu0 }
 0x7be   :  { %1837 = vrot.lane.b32.xlu1 %v2062_v53, %s2359_s30  ;;  %v1826_v50 = vpop.f32.mrb[3].mxu0 }
 0x7bf   :  { %1835 = vst.msk [vmem:[#allocation16] sm:$0xff] %vm84_vm0, %v1826_v50 }
 0x830   :  { %v1838_v27 = vpop.permute.xlu1 %1837 }
 0x831   :  { %1841 = vst.msk [vmem:[#allocation16] sm:$0xff] %vm1840_vm14, %v1838_v27 }
 0x832   :  { %2309 = shalt.err (!%p2306_p1)
}
 0x833   :  { %s2310_s9 = scalar_lea.hbm %s2943_s3, 128 }
 0x834   :  { %p2311_p2 = scmp.ne.s32.totalorder %s2943_s3, %s2310_s9  ;;  %p2314_p3 = scmp.lt.u32.totalorder %s2310_s9, %s2943_s3 }
 0x836   :  { %p2316_p4 = pnand %p2314_p3, %p2311_p2 }
 0x838   :  { %2319 = shalt.err (!%p2316_p4)
}
 0x839   :  { %1851 = dma.vmem_to_hbm [thread:$0]  %s1849_s5, 128, %s2943_s3, [#allocation12]  }
 0x83a   :  { %2336 = dma.done.wait [#allocation12], 128  }
 0x83b   :  { %2337 = vsyncadd [#allocation12], 4294967168 }
 0x83c   :  { %1855 = vsyncpa [#allocation11], 1 }
 0x83d   :  { %1856 = vsyncpa [#allocation14], 1 }
 0x83e   :  { %1857 = vsyncpa [#allocation12], 1 }

</bundles_post_ra>
